<compile_context>
chip_gen: v5e
topology: v5e:2x2
jax: 0.10.0
libtpu: 0.0.40
codegen_flags: <defaults>
</compile_context>

<pallas_src>
import functools
import math

import jax
import jax.numpy as jnp
from jax import lax
from jax.experimental import pallas as pl
from jax.experimental.pallas import tpu as pltpu

# DH table for '7DoF-7R-Panda': (theta_offset, d, a, alpha).
_DH = (
    (0.0, 0.333, 0.0, 0.0),
    (0.0, 0.0, 0.0, -math.pi / 2),
    (0.0, 0.316, 0.0, math.pi / 2),
    (0.0, 0.0, 0.0825, math.pi / 2),
    (0.0, 0.384, -0.0825, -math.pi / 2),
    (0.0, 0.0, 0.0, math.pi / 2),
    (0.0, 0.107, 0.088, math.pi / 2),
)
_NJ = len(_DH)

_LANES = 128
_SUBLANES = 8
_CHUNK = _LANES * _SUBLANES        # 1024 batch elements per in-kernel strip
_K_MAX = 64                        # max strips per grid step (VMEM-safe on v5e)

# Entries of the final 3x4 transform actually consumed by the loss:
# row 0 (r00, r01, r02, px), r12, py, r22, pz.
_NEEDED_FINAL = frozenset((0, 1, 2, 3, 6, 7, 10, 11))


def _snap(v, tol=1e-9):
    """Snap near-exact trig constants (cos(pi/2) ~ 6e-17) to exact 0 / +-1."""
    for t in (-1.0, 0.0, 1.0):
        if abs(v - t) < tol:
            return t
    return float(v)


def _is_const(x):
    return isinstance(x, (int, float))


def _cmul(x, y):
    """Multiply with Python-constant folding (prunes 0 / +-1 factors)."""
    if _is_const(x) and _is_const(y):
        return x * y
    if _is_const(x):
        x, y = y, x
    if _is_const(y):
        if y == 0.0:
            return 0.0
        if y == 1.0:
            return x
        if y == -1.0:
            return -x
    return x * y


def _cadd(x, y):
    """Add with Python-constant folding (prunes + 0 terms)."""
    if _is_const(x) and _is_const(y):
        return x + y
    if _is_const(x):
        x, y = y, x
    if _is_const(y) and y == 0.0:
        return x
    return x + y


def _affine_mul(A, B, needed=None):
    """Compose two 3x4 affine transforms (implicit [0,0,0,1] bottom row).

    A, B are row-major lists of 12 entries, each a Python float constant or a
    (8, 128) array; constant-zero terms are pruned at trace time.  If `needed`
    is given, only those output indices are computed (others become None).
    """
    C = []
    for r in range(3):
        for c in range(4):
            idx = 4 * r + c
            if needed is not None and idx not in needed:
                C.append(None)
                continue
            acc = _cmul(A[4 * r + 0], B[0 * 4 + c])
            acc = _cadd(acc, _cmul(A[4 * r + 1], B[1 * 4 + c]))
            acc = _cadd(acc, _cmul(A[4 * r + 2], B[2 * 4 + c]))
            if c == 3:
                acc = _cadd(acc, A[4 * r + 3])   # translation column
            C.append(acc)
    return C


def fk_loss_kernel(joints_ref, poses_ref, out_ref, *, batch):
    """joints_ref: (7, K*8, 128), poses_ref: (6, K*8, 128), out_ref: (8, 128)."""
    n_chunks = joints_ref.shape[1] // _SUBLANES
    shape = (_SUBLANES, _LANES)

    def as_arr(x):
        return jnp.full(shape, x, jnp.float32) if _is_const(x) else x

    # Loop-invariant parts of the padding mask (hoisted out of the strip loop).
    sub = jax.lax.broadcasted_iota(jnp.int32, shape, 0)
    lane = jax.lax.broadcasted_iota(jnp.int32, shape, 1)
    local = sub * _LANES + lane
    base = pl.program_id(0) * (n_chunks * _CHUNK)

    def chunk_body(c, acc):
        row = pl.multiple_of(c * _SUBLANES, _SUBLANES)

        def joint_T(j):
            theta = joints_ref[j, pl.ds(row, _SUBLANES), :]   # (8, 128)
            _, d, a, alpha = _DH[j]
            ct = jnp.cos(theta)
            st = jnp.sin(theta)
            ca = _snap(math.cos(alpha))       # 0 / +-1 for the Panda
            sa = _snap(math.sin(alpha))
            return [
                ct, _cmul(st, -ca), _cmul(st, sa), _cmul(ct, a),
                st, _cmul(ct, ca), _cmul(ct, -sa), _cmul(st, a),
                0.0, sa, ca, d,
            ]

        # Chain T_total = T_0 @ T_1 @ ... @ T_6 as a 3x4 affine; last
        # composition only produces the 8 entries the loss consumes.
        T = joint_T(0)
        for j in range(1, _NJ):
            needed = _NEEDED_FINAL if j == _NJ - 1 else None
            T = _affine_mul(T, joint_T(j), needed=needed)

        px, py, pz = as_arr(T[3]), as_arr(T[7]), as_arr(T[11])
        r00, r01, r02 = as_arr(T[0]), as_arr(T[1]), as_arr(T[2])
        r12, r22 = as_arr(T[6]), as_arr(T[10])

        # pytorch3d matrix_to_euler_angles(R, "XYZ"):
        #   a0 = atan2(-R[1,2], R[2,2]); a1 = asin(R[0,2]); a2 = atan2(-R[0,1], R[0,0])
        rpy0 = jnp.arctan2(-r12, r22)
        x = jnp.clip(r02, -1.0, 1.0)
        rpy1 = jnp.arctan2(x, jnp.sqrt(jnp.maximum(1.0 - x * x, 0.0)))  # asin
        rpy2 = jnp.arctan2(-r01, r00)

        fk = (px, py, pz, rpy0, rpy1, rpy2)

        total = jnp.zeros(shape, jnp.float32)
        for t in range(6):
            diff = fk[t] - poses_ref[t, pl.ds(row, _SUBLANES), :]
            total = total + diff * diff

        # Single mask multiply per strip: (d*m)^2 == d^2*m for m in {0,1}.
        gidx = base + c * _CHUNK + local
        valid = (gidx < batch).astype(jnp.float32)
        return acc + total * valid

    init = jnp.zeros(shape, jnp.float32)
    if n_chunks == 1:
        acc = chunk_body(jnp.int32(0), init)
    else:
        acc = lax.fori_loop(0, n_chunks, chunk_body, init, unroll=2)

    out_ref[...] = acc                    # one lane-dense vreg per tile


def fk_loss(joints, poses):
    """joints: (B, 7) f32, poses: (B, 6) f32  ->  scalar f32 MSE loss."""
    B = joints.shape[0]
    n_chunks = pl.cdiv(B, _CHUNK)
    # Strips per grid step: amortize the ~600-cycle step overhead, but keep
    # >= 2 grid steps when the batch allows so v7x can use both TensorCores.
    if n_chunks >= 2:
        K = max(1, min(_K_MAX, n_chunks // 2))
    else:
        K = 1
    n_tiles = pl.cdiv(n_chunks, K)
    B_pad = n_tiles * K * _CHUNK

    jt = joints.astype(jnp.float32)
    pt = poses.astype(jnp.float32)
    if B_pad != B:
        jt = jnp.pad(jt, ((0, B_pad - B), (0, 0)))
        pt = jnp.pad(pt, ((0, B_pad - B), (0, 0)))
    # Tile-leading, contiguous-per-tile layout: (n_tiles, feat, K*8, 128).
    # TODO(synk): if callers can hand over batch-minor inputs this relayout
    # (one XLA transpose per input) can be dropped entirely.
    jt = jt.reshape(n_tiles, K * _SUBLANES, _LANES, _NJ).transpose(0, 3, 1, 2)
    pt = pt.reshape(n_tiles, K * _SUBLANES, _LANES, 6).transpose(0, 3, 1, 2)

    partial = pl.pallas_call(
        functools.partial(fk_loss_kernel, batch=B),
        out_shape=jax.ShapeDtypeStruct((n_tiles, _SUBLANES, _LANES), jnp.float32),
        grid=(n_tiles,),
        in_specs=[
            pl.BlockSpec((None, _NJ, K * _SUBLANES, _LANES),
                         lambda i: (i, 0, 0, 0)),
            pl.BlockSpec((None, 6, K * _SUBLANES, _LANES),
                         lambda i: (i, 0, 0, 0)),
        ],
        out_specs=pl.BlockSpec((None, _SUBLANES, _LANES), lambda i: (i, 0, 0)),
        compiler_params=pltpu.CompilerParams(
            dimension_semantics=("parallel",)),   # shard tiles over TCs on v7x
    )(jt, pt)

    return jnp.sum(partial) / jnp.float32(B * 6)


def fk_loss_ref(joints, poses):
    """Pure-JAX reference mirroring the PyTorch module."""
    B = joints.shape[0]
    DH = jnp.asarray(_DH, jnp.float32)                  # (7, 4)
    theta = joints                                      # theta offsets are 0
    d = jnp.broadcast_to(DH[:, 1][None, :], (B, _NJ))
    a = jnp.broadcast_to(DH[:, 2][None, :], (B, _NJ))
    al = jnp.broadcast_to(DH[:, 3][None, :], (B, _NJ))
    ct, st = jnp.cos(theta), jnp.sin(theta)
    ca, sa = jnp.cos(al), jnp.sin(al)
    z = jnp.zeros((B, _NJ), jnp.float32)
    o = jnp.ones((B, _NJ), jnp.float32)
    T = jnp.stack(
        [ct, -st * ca, st * sa, a * ct,
         st, ct * ca, -ct * sa, a * st,
         z, sa, ca, d,
         z, z, z, o], axis=-1).reshape(B, _NJ, 4, 4)
    Tt = T[:, 0]
    for i in range(1, _NJ):
        Tt = Tt @ T[:, i]
    pos = Tt[:, :3, 3]
    R = Tt[:, :3, :3]
    rpy = jnp.stack(
        [jnp.arctan2(-R[:, 1, 2], R[:, 2, 2]),
         jnp.arcsin(jnp.clip(R[:, 0, 2], -1.0, 1.0)),
         jnp.arctan2(-R[:, 0, 1], R[:, 0, 0])], axis=-1)
    fk = jnp.concatenate([pos, rpy], axis=1)
    return jnp.mean((fk - poses) ** 2)


if __name__ == "__main__":
    key = jax.random.PRNGKey(0)
    k1, k2, k3, k4, k5, k6 = jax.random.split(key, 6)

    # Small batch: single tile, single strip, heavy padding mask.
    B = 8
    joints = jax.random.uniform(k1, (B, 7), jnp.float32, minval=-3.1, maxval=3.1)
    poses = jax.random.normal(k2, (B, 6), dtype=jnp.float32)
    loss = jax.block_until_ready(fk_loss(joints, poses))
    ref = fk_loss_ref(joints, poses)
    assert jnp.allclose(loss, ref, rtol=1e-4, atol=1e-5), (loss, ref)

    # Two grid tiles (K=1), padded last tile.
    B2 = 1300
    joints2 = jax.random.uniform(k3, (B2, 7), jnp.float32, minval=-3.1, maxval=3.1)
    poses2 = jax.random.normal(k4, (B2, 6), dtype=jnp.float32)
    loss2 = jax.block_until_ready(fk_loss(joints2, poses2))
    ref2 = fk_loss_ref(joints2, poses2)
    assert jnp.allclose(loss2, ref2, rtol=1e-4, atol=1e-5), (loss2, ref2)

    # Multi-strip tiles (K=2, 3 tiles): exercises the in-kernel fori_loop,
    # a partially-valid strip and a fully-padded trailing strip.
    B3 = 5000
    joints3 = jax.random.uniform(k5, (B3, 7), jnp.float32, minval=-3.1, maxval=3.1)
    poses3 = jax.random.normal(k6, (B3, 6), dtype=jnp.float32)
    loss3 = jax.block_until_ready(fk_loss(joints3, poses3))
    ref3 = fk_loss_ref(joints3, poses3)
    assert jnp.allclose(loss3, ref3, rtol=1e-4, atol=1e-5), (loss3, ref3)

    print("KERNEL_OK")
</pallas_src>

<mosaic_0001>
module attributes {stable_mosaic.version = 11 : i64} {
  func.func @fk_loss_kernel(%arg0: i32, %arg1: memref<1x7x8x128xf32, #tpu.memory_space<vmem>>, %arg2: memref<1x6x8x128xf32, #tpu.memory_space<vmem>>, %arg3: memref<1x8x128xf32, #tpu.memory_space<vmem>>) attributes {dimension_semantics = [#tpu.dimension_semantics<parallel>], iteration_bounds = array<i64: 1>, scalar_prefetch = 0 : i64, scratch_operands = 0 : i64, tpu.core_type = #tpu.core_type<tc>, window_params = [{transform_indices = @transform_0, window_bounds = array<i64: 1, 7, 8, 128>}, {transform_indices = @transform_1, window_bounds = array<i64: 1, 6, 8, 128>}, {transform_indices = @transform_2, window_bounds = array<i64: 1, 8, 128>}]} {
    %0 = tpu.iota {dimensions = array<i32: 0>} : vector<8x128xi32>
    %1 = tpu.iota {dimensions = array<i32: 1>} : vector<8x128xi32>
    %c128_i32 = arith.constant 128 : i32
    %2 = vector.broadcast %c128_i32 : i32 to vector<8x128xi32>
    %3 = arith.muli %0, %2 : vector<8x128xi32>
    %4 = arith.addi %3, %1 : vector<8x128xi32>
    %c1024_i32 = arith.constant 1024 : i32
    %5 = arith.muli %arg0, %c1024_i32 : i32
    %cst = arith.constant 0.000000e+00 : f32
    %6 = vector.broadcast %cst : f32 to vector<8x128xf32>
    %c0_i32 = arith.constant 0 : i32
    %c8_i32 = arith.constant 8 : i32
    %7 = arith.muli %c0_i32, %c8_i32 : i32
    %8 = tpu.assume_multiple %7, 8 : i32
    %c0 = arith.constant 0 : index
    %c0_0 = arith.constant 0 : index
    %9 = arith.index_cast %8 : i32 to index
    %c0_1 = arith.constant 0 : index
    %10 = vector.load %arg1[%c0, %c0_0, %9, %c0_1] : memref<1x7x8x128xf32, #tpu.memory_space<vmem>>, vector<1x1x8x128xf32>
    %11 = vector.shape_cast %10 : vector<1x1x8x128xf32> to vector<8x128xf32>
    %12 = math.cos %11 : vector<8x128xf32>
    %13 = math.sin %11 : vector<8x128xf32>
    %cst_2 = arith.constant 0.000000e+00 : f32
    %14 = vector.broadcast %cst_2 : f32 to vector<8x128xf32>
    %15 = arith.subf %14, %13 : vector<8x128xf32>
    %c0_3 = arith.constant 0 : index
    %c1 = arith.constant 1 : index
    %16 = arith.index_cast %8 : i32 to index
    %c0_4 = arith.constant 0 : index
    %17 = vector.load %arg1[%c0_3, %c1, %16, %c0_4] : memref<1x7x8x128xf32, #tpu.memory_space<vmem>>, vector<1x1x8x128xf32>
    %18 = vector.shape_cast %17 : vector<1x1x8x128xf32> to vector<8x128xf32>
    %19 = math.cos %18 : vector<8x128xf32>
    %20 = math.sin %18 : vector<8x128xf32>
    %cst_5 = arith.constant 0.000000e+00 : f32
    %21 = vector.broadcast %cst_5 : f32 to vector<8x128xf32>
    %22 = arith.subf %21, %20 : vector<8x128xf32>
    %23 = arith.mulf %12, %19 : vector<8x128xf32>
    %24 = arith.mulf %15, %20 : vector<8x128xf32>
    %25 = arith.addf %23, %24 : vector<8x128xf32>
    %26 = arith.mulf %12, %22 : vector<8x128xf32>
    %27 = arith.mulf %15, %19 : vector<8x128xf32>
    %28 = arith.addf %26, %27 : vector<8x128xf32>
    %29 = arith.mulf %13, %19 : vector<8x128xf32>
    %30 = arith.mulf %12, %20 : vector<8x128xf32>
    %31 = arith.addf %29, %30 : vector<8x128xf32>
    %32 = arith.mulf %13, %22 : vector<8x128xf32>
    %33 = arith.mulf %12, %19 : vector<8x128xf32>
    %34 = arith.addf %32, %33 : vector<8x128xf32>
    %c0_6 = arith.constant 0 : index
    %c2 = arith.constant 2 : index
    %35 = arith.index_cast %8 : i32 to index
    %c0_7 = arith.constant 0 : index
    %36 = vector.load %arg1[%c0_6, %c2, %35, %c0_7] : memref<1x7x8x128xf32, #tpu.memory_space<vmem>>, vector<1x1x8x128xf32>
    %37 = vector.shape_cast %36 : vector<1x1x8x128xf32> to vector<8x128xf32>
    %38 = math.cos %37 : vector<8x128xf32>
    %39 = math.sin %37 : vector<8x128xf32>
    %cst_8 = arith.constant 0.000000e+00 : f32
    %40 = vector.broadcast %cst_8 : f32 to vector<8x128xf32>
    %41 = arith.subf %40, %38 : vector<8x128xf32>
    %42 = arith.mulf %25, %38 : vector<8x128xf32>
    %43 = arith.mulf %25, %39 : vector<8x128xf32>
    %cst_9 = arith.constant 3.160000e-01 : f32
    %44 = vector.broadcast %cst_9 : f32 to vector<8x128xf32>
    %45 = arith.mulf %28, %44 : vector<8x128xf32>
    %46 = arith.mulf %31, %38 : vector<8x128xf32>
    %47 = arith.mulf %31, %39 : vector<8x128xf32>
    %cst_10 = arith.constant 3.160000e-01 : f32
    %48 = vector.broadcast %cst_10 : f32 to vector<8x128xf32>
    %49 = arith.mulf %34, %48 : vector<8x128xf32>
    %cst_11 = arith.constant 0.000000e+00 : f32
    %50 = vector.broadcast %cst_11 : f32 to vector<8x128xf32>
    %51 = arith.subf %50, %39 : vector<8x128xf32>
    %cst_12 = arith.constant 0.000000e+00 : f32
    %52 = vector.broadcast %cst_12 : f32 to vector<8x128xf32>
    %53 = arith.subf %52, %41 : vector<8x128xf32>
    %c0_13 = arith.constant 0 : index
    %c3 = arith.constant 3 : index
    %54 = arith.index_cast %8 : i32 to index
    %c0_14 = arith.constant 0 : index
    %55 = vector.load %arg1[%c0_13, %c3, %54, %c0_14] : memref<1x7x8x128xf32, #tpu.memory_space<vmem>>, vector<1x1x8x128xf32>
    %56 = vector.shape_cast %55 : vector<1x1x8x128xf32> to vector<8x128xf32>
    %57 = math.cos %56 : vector<8x128xf32>
    %58 = math.sin %56 : vector<8x128xf32>
    %cst_15 = arith.constant 8.250000e-02 : f32
    %59 = vector.broadcast %cst_15 : f32 to vector<8x128xf32>
    %60 = arith.mulf %57, %59 : vector<8x128xf32>
    %cst_16 = arith.constant 0.000000e+00 : f32
    %61 = vector.broadcast %cst_16 : f32 to vector<8x128xf32>
    %62 = arith.subf %61, %57 : vector<8x128xf32>
    %cst_17 = arith.constant 8.250000e-02 : f32
    %63 = vector.broadcast %cst_17 : f32 to vector<8x128xf32>
    %64 = arith.mulf %58, %63 : vector<8x128xf32>
    %65 = arith.mulf %42, %57 : vector<8x128xf32>
    %66 = arith.mulf %28, %58 : vector<8x128xf32>
    %67 = arith.addf %65, %66 : vector<8x128xf32>
    %68 = arith.mulf %42, %58 : vector<8x128xf32>
    %69 = arith.mulf %28, %62 : vector<8x128xf32>
    %70 = arith.addf %68, %69 : vector<8x128xf32>
    %71 = arith.mulf %42, %60 : vector<8x128xf32>
    %72 = arith.mulf %28, %64 : vector<8x128xf32>
    %73 = arith.addf %71, %72 : vector<8x128xf32>
    %74 = arith.addf %73, %45 : vector<8x128xf32>
    %75 = arith.mulf %46, %57 : vector<8x128xf32>
    %76 = arith.mulf %34, %58 : vector<8x128xf32>
    %77 = arith.addf %75, %76 : vector<8x128xf32>
    %78 = arith.mulf %46, %58 : vector<8x128xf32>
    %79 = arith.mulf %34, %62 : vector<8x128xf32>
    %80 = arith.addf %78, %79 : vector<8x128xf32>
    %81 = arith.mulf %46, %60 : vector<8x128xf32>
    %82 = arith.mulf %34, %64 : vector<8x128xf32>
    %83 = arith.addf %81, %82 : vector<8x128xf32>
    %84 = arith.addf %83, %49 : vector<8x128xf32>
    %85 = arith.mulf %51, %57 : vector<8x128xf32>
    %86 = arith.mulf %51, %58 : vector<8x128xf32>
    %87 = arith.mulf %51, %60 : vector<8x128xf32>
    %cst_18 = arith.constant 3.330000e-01 : f32
    %88 = vector.broadcast %cst_18 : f32 to vector<8x128xf32>
    %89 = arith.addf %87, %88 : vector<8x128xf32>
    %c0_19 = arith.constant 0 : index
    %c4 = arith.constant 4 : index
    %90 = arith.index_cast %8 : i32 to index
    %c0_20 = arith.constant 0 : index
    %91 = vector.load %arg1[%c0_19, %c4, %90, %c0_20] : memref<1x7x8x128xf32, #tpu.memory_space<vmem>>, vector<1x1x8x128xf32>
    %92 = vector.shape_cast %91 : vector<1x1x8x128xf32> to vector<8x128xf32>
    %93 = math.cos %92 : vector<8x128xf32>
    %94 = math.sin %92 : vector<8x128xf32>
    %cst_21 = arith.constant 0.000000e+00 : f32
    %95 = vector.broadcast %cst_21 : f32 to vector<8x128xf32>
    %96 = arith.subf %95, %94 : vector<8x128xf32>
    %cst_22 = arith.constant -8.250000e-02 : f32
    %97 = vector.broadcast %cst_22 : f32 to vector<8x128xf32>
    %98 = arith.mulf %93, %97 : vector<8x128xf32>
    %cst_23 = arith.constant -8.250000e-02 : f32
    %99 = vector.broadcast %cst_23 : f32 to vector<8x128xf32>
    %100 = arith.mulf %94, %99 : vector<8x128xf32>
    %101 = arith.mulf %67, %93 : vector<8x128xf32>
    %102 = arith.mulf %43, %94 : vector<8x128xf32>
    %103 = arith.addf %101, %102 : vector<8x128xf32>
    %cst_24 = arith.constant 0.000000e+00 : f32
    %104 = vector.broadcast %cst_24 : f32 to vector<8x128xf32>
    %105 = arith.subf %104, %70 : vector<8x128xf32>
    %106 = arith.mulf %67, %96 : vector<8x128xf32>
    %107 = arith.mulf %43, %93 : vector<8x128xf32>
    %108 = arith.addf %106, %107 : vector<8x128xf32>
    %109 = arith.mulf %67, %98 : vector<8x128xf32>
    %110 = arith.mulf %43, %100 : vector<8x128xf32>
    %111 = arith.addf %109, %110 : vector<8x128xf32>
    %cst_25 = arith.constant 3.840000e-01 : f32
    %112 = vector.broadcast %cst_25 : f32 to vector<8x128xf32>
    %113 = arith.mulf %70, %112 : vector<8x128xf32>
    %114 = arith.addf %111, %113 : vector<8x128xf32>
    %115 = arith.addf %114, %74 : vector<8x128xf32>
    %116 = arith.mulf %77, %93 : vector<8x128xf32>
    %117 = arith.mulf %47, %94 : vector<8x128xf32>
    %118 = arith.addf %116, %117 : vector<8x128xf32>
    %cst_26 = arith.constant 0.000000e+00 : f32
    %119 = vector.broadcast %cst_26 : f32 to vector<8x128xf32>
    %120 = arith.subf %119, %80 : vector<8x128xf32>
    %121 = arith.mulf %77, %96 : vector<8x128xf32>
    %122 = arith.mulf %47, %93 : vector<8x128xf32>
    %123 = arith.addf %121, %122 : vector<8x128xf32>
    %124 = arith.mulf %77, %98 : vector<8x128xf32>
    %125 = arith.mulf %47, %100 : vector<8x128xf32>
    %126 = arith.addf %124, %125 : vector<8x128xf32>
    %cst_27 = arith.constant 3.840000e-01 : f32
    %127 = vector.broadcast %cst_27 : f32 to vector<8x128xf32>
    %128 = arith.mulf %80, %127 : vector<8x128xf32>
    %129 = arith.addf %126, %128 : vector<8x128xf32>
    %130 = arith.addf %129, %84 : vector<8x128xf32>
    %131 = arith.mulf %85, %93 : vector<8x128xf32>
    %132 = arith.mulf %53, %94 : vector<8x128xf32>
    %133 = arith.addf %131, %132 : vector<8x128xf32>
    %cst_28 = arith.constant 0.000000e+00 : f32
    %134 = vector.broadcast %cst_28 : f32 to vector<8x128xf32>
    %135 = arith.subf %134, %86 : vector<8x128xf32>
    %136 = arith.mulf %85, %96 : vector<8x128xf32>
    %137 = arith.mulf %53, %93 : vector<8x128xf32>
    %138 = arith.addf %136, %137 : vector<8x128xf32>
    %139 = arith.mulf %85, %98 : vector<8x128xf32>
    %140 = arith.mulf %53, %100 : vector<8x128xf32>
    %141 = arith.addf %139, %140 : vector<8x128xf32>
    %cst_29 = arith.constant 3.840000e-01 : f32
    %142 = vector.broadcast %cst_29 : f32 to vector<8x128xf32>
    %143 = arith.mulf %86, %142 : vector<8x128xf32>
    %144 = arith.addf %141, %143 : vector<8x128xf32>
    %145 = arith.addf %144, %89 : vector<8x128xf32>
    %c0_30 = arith.constant 0 : index
    %c5 = arith.constant 5 : index
    %146 = arith.index_cast %8 : i32 to index
    %c0_31 = arith.constant 0 : index
    %147 = vector.load %arg1[%c0_30, %c5, %146, %c0_31] : memref<1x7x8x128xf32, #tpu.memory_space<vmem>>, vector<1x1x8x128xf32>
    %148 = vector.shape_cast %147 : vector<1x1x8x128xf32> to vector<8x128xf32>
    %149 = math.cos %148 : vector<8x128xf32>
    %150 = math.sin %148 : vector<8x128xf32>
    %cst_32 = arith.constant 0.000000e+00 : f32
    %151 = vector.broadcast %cst_32 : f32 to vector<8x128xf32>
    %152 = arith.subf %151, %149 : vector<8x128xf32>
    %153 = arith.mulf %103, %149 : vector<8x128xf32>
    %154 = arith.mulf %105, %150 : vector<8x128xf32>
    %155 = arith.addf %153, %154 : vector<8x128xf32>
    %156 = arith.mulf %103, %150 : vector<8x128xf32>
    %157 = arith.mulf %105, %152 : vector<8x128xf32>
    %158 = arith.addf %156, %157 : vector<8x128xf32>
    %159 = arith.mulf %118, %149 : vector<8x128xf32>
    %160 = arith.mulf %120, %150 : vector<8x128xf32>
    %161 = arith.addf %159, %160 : vector<8x128xf32>
    %162 = arith.mulf %118, %150 : vector<8x128xf32>
    %163 = arith.mulf %120, %152 : vector<8x128xf32>
    %164 = arith.addf %162, %163 : vector<8x128xf32>
    %165 = arith.mulf %133, %149 : vector<8x128xf32>
    %166 = arith.mulf %135, %150 : vector<8x128xf32>
    %167 = arith.addf %165, %166 : vector<8x128xf32>
    %168 = arith.mulf %133, %150 : vector<8x128xf32>
    %169 = arith.mulf %135, %152 : vector<8x128xf32>
    %170 = arith.addf %168, %169 : vector<8x128xf32>
    %c0_33 = arith.constant 0 : index
    %c6 = arith.constant 6 : index
    %171 = arith.index_cast %8 : i32 to index
    %c0_34 = arith.constant 0 : index
    %172 = vector.load %arg1[%c0_33, %c6, %171, %c0_34] : memref<1x7x8x128xf32, #tpu.memory_space<vmem>>, vector<1x1x8x128xf32>
    %173 = vector.shape_cast %172 : vector<1x1x8x128xf32> to vector<8x128xf32>
    %174 = math.cos %173 : vector<8x128xf32>
    %175 = math.sin %173 : vector<8x128xf32>
    %cst_35 = arith.constant 0.0879999995 : f32
    %176 = vector.broadcast %cst_35 : f32 to vector<8x128xf32>
    %177 = arith.mulf %174, %176 : vector<8x128xf32>
    %cst_36 = arith.constant 0.000000e+00 : f32
    %178 = vector.broadcast %cst_36 : f32 to vector<8x128xf32>
    %179 = arith.subf %178, %174 : vector<8x128xf32>
    %cst_37 = arith.constant 0.0879999995 : f32
    %180 = vector.broadcast %cst_37 : f32 to vector<8x128xf32>
    %181 = arith.mulf %175, %180 : vector<8x128xf32>
    %182 = arith.mulf %155, %174 : vector<8x128xf32>
    %183 = arith.mulf %108, %175 : vector<8x128xf32>
    %184 = arith.addf %182, %183 : vector<8x128xf32>
    %185 = arith.mulf %155, %175 : vector<8x128xf32>
    %186 = arith.mulf %108, %179 : vector<8x128xf32>
    %187 = arith.addf %185, %186 : vector<8x128xf32>
    %188 = arith.mulf %155, %177 : vector<8x128xf32>
    %189 = arith.mulf %108, %181 : vector<8x128xf32>
    %190 = arith.addf %188, %189 : vector<8x128xf32>
    %cst_38 = arith.constant 1.070000e-01 : f32
    %191 = vector.broadcast %cst_38 : f32 to vector<8x128xf32>
    %192 = arith.mulf %158, %191 : vector<8x128xf32>
    %193 = arith.addf %190, %192 : vector<8x128xf32>
    %194 = arith.addf %193, %115 : vector<8x128xf32>
    %195 = arith.mulf %161, %175 : vector<8x128xf32>
    %196 = arith.mulf %123, %179 : vector<8x128xf32>
    %197 = arith.addf %195, %196 : vector<8x128xf32>
    %198 = arith.mulf %161, %177 : vector<8x128xf32>
    %199 = arith.mulf %123, %181 : vector<8x128xf32>
    %200 = arith.addf %198, %199 : vector<8x128xf32>
    %cst_39 = arith.constant 1.070000e-01 : f32
    %201 = vector.broadcast %cst_39 : f32 to vector<8x128xf32>
    %202 = arith.mulf %164, %201 : vector<8x128xf32>
    %203 = arith.addf %200, %202 : vector<8x128xf32>
    %204 = arith.addf %203, %130 : vector<8x128xf32>
    %205 = arith.mulf %167, %175 : vector<8x128xf32>
    %206 = arith.mulf %138, %179 : vector<8x128xf32>
    %207 = arith.addf %205, %206 : vector<8x128xf32>
    %208 = arith.mulf %167, %177 : vector<8x128xf32>
    %209 = arith.mulf %138, %181 : vector<8x128xf32>
    %210 = arith.addf %208, %209 : vector<8x128xf32>
    %cst_40 = arith.constant 1.070000e-01 : f32
    %211 = vector.broadcast %cst_40 : f32 to vector<8x128xf32>
    %212 = arith.mulf %170, %211 : vector<8x128xf32>
    %213 = arith.addf %210, %212 : vector<8x128xf32>
    %214 = arith.addf %213, %145 : vector<8x128xf32>
    %cst_41 = arith.constant 0.000000e+00 : f32
    %215 = vector.broadcast %cst_41 : f32 to vector<8x128xf32>
    %216 = arith.subf %215, %197 : vector<8x128xf32>
    %217 = math.atan2 %216, %207 : vector<8x128xf32>
    %cst_42 = arith.constant -1.000000e+00 : f32
    %cst_43 = arith.constant 1.000000e+00 : f32
    %218 = vector.broadcast %cst_42 : f32 to vector<8x128xf32>
    %219 = arith.maximumf %218, %187 : vector<8x128xf32>
    %220 = vector.broadcast %cst_43 : f32 to vector<8x128xf32>
    %221 = arith.minimumf %220, %219 : vector<8x128xf32>
    %222 = arith.mulf %221, %221 : vector<8x128xf32>
    %cst_44 = arith.constant 1.000000e+00 : f32
    %223 = vector.broadcast %cst_44 : f32 to vector<8x128xf32>
    %224 = arith.subf %223, %222 : vector<8x128xf32>
    %cst_45 = arith.constant 0.000000e+00 : f32
    %225 = vector.broadcast %cst_45 : f32 to vector<8x128xf32>
    %226 = arith.maximumf %224, %225 : vector<8x128xf32>
    %227 = math.sqrt %226 : vector<8x128xf32>
    %228 = math.atan2 %221, %227 : vector<8x128xf32>
    %cst_46 = arith.constant 0.000000e+00 : f32
    %229 = vector.broadcast %cst_46 : f32 to vector<8x128xf32>
    %230 = arith.subf %229, %158 : vector<8x128xf32>
    %231 = math.atan2 %230, %184 : vector<8x128xf32>
    %cst_47 = arith.constant 0.000000e+00 : f32
    %232 = vector.broadcast %cst_47 : f32 to vector<8x128xf32>
    %c0_48 = arith.constant 0 : index
    %c0_49 = arith.constant 0 : index
    %233 = arith.index_cast %8 : i32 to index
    %c0_50 = arith.constant 0 : index
    %234 = vector.load %arg2[%c0_48, %c0_49, %233, %c0_50] : memref<1x6x8x128xf32, #tpu.memory_space<vmem>>, vector<1x1x8x128xf32>
    %235 = vector.shape_cast %234 : vector<1x1x8x128xf32> to vector<8x128xf32>
    %236 = arith.subf %194, %235 : vector<8x128xf32>
    %237 = arith.mulf %236, %236 : vector<8x128xf32>
    %238 = arith.addf %232, %237 : vector<8x128xf32>
    %c0_51 = arith.constant 0 : index
    %c1_52 = arith.constant 1 : index
    %239 = arith.index_cast %8 : i32 to index
    %c0_53 = arith.constant 0 : index
    %240 = vector.load %arg2[%c0_51, %c1_52, %239, %c0_53] : memref<1x6x8x128xf32, #tpu.memory_space<vmem>>, vector<1x1x8x128xf32>
    %241 = vector.shape_cast %240 : vector<1x1x8x128xf32> to vector<8x128xf32>
    %242 = arith.subf %204, %241 : vector<8x128xf32>
    %243 = arith.mulf %242, %242 : vector<8x128xf32>
    %244 = arith.addf %238, %243 : vector<8x128xf32>
    %c0_54 = arith.constant 0 : index
    %c2_55 = arith.constant 2 : index
    %245 = arith.index_cast %8 : i32 to index
    %c0_56 = arith.constant 0 : index
    %246 = vector.load %arg2[%c0_54, %c2_55, %245, %c0_56] : memref<1x6x8x128xf32, #tpu.memory_space<vmem>>, vector<1x1x8x128xf32>
    %247 = vector.shape_cast %246 : vector<1x1x8x128xf32> to vector<8x128xf32>
    %248 = arith.subf %214, %247 : vector<8x128xf32>
    %249 = arith.mulf %248, %248 : vector<8x128xf32>
    %250 = arith.addf %244, %249 : vector<8x128xf32>
    %c0_57 = arith.constant 0 : index
    %c3_58 = arith.constant 3 : index
    %251 = arith.index_cast %8 : i32 to index
    %c0_59 = arith.constant 0 : index
    %252 = vector.load %arg2[%c0_57, %c3_58, %251, %c0_59] : memref<1x6x8x128xf32, #tpu.memory_space<vmem>>, vector<1x1x8x128xf32>
    %253 = vector.shape_cast %252 : vector<1x1x8x128xf32> to vector<8x128xf32>
    %254 = arith.subf %217, %253 : vector<8x128xf32>
    %255 = arith.mulf %254, %254 : vector<8x128xf32>
    %256 = arith.addf %250, %255 : vector<8x128xf32>
    %c0_60 = arith.constant 0 : index
    %c4_61 = arith.constant 4 : index
    %257 = arith.index_cast %8 : i32 to index
    %c0_62 = arith.constant 0 : index
    %258 = vector.load %arg2[%c0_60, %c4_61, %257, %c0_62] : memref<1x6x8x128xf32, #tpu.memory_space<vmem>>, vector<1x1x8x128xf32>
    %259 = vector.shape_cast %258 : vector<1x1x8x128xf32> to vector<8x128xf32>
    %260 = arith.subf %228, %259 : vector<8x128xf32>
    %261 = arith.mulf %260, %260 : vector<8x128xf32>
    %262 = arith.addf %256, %261 : vector<8x128xf32>
    %c0_63 = arith.constant 0 : index
    %c5_64 = arith.constant 5 : index
    %263 = arith.index_cast %8 : i32 to index
    %c0_65 = arith.constant 0 : index
    %264 = vector.load %arg2[%c0_63, %c5_64, %263, %c0_65] : memref<1x6x8x128xf32, #tpu.memory_space<vmem>>, vector<1x1x8x128xf32>
    %265 = vector.shape_cast %264 : vector<1x1x8x128xf32> to vector<8x128xf32>
    %266 = arith.subf %231, %265 : vector<8x128xf32>
    %267 = arith.mulf %266, %266 : vector<8x128xf32>
    %268 = arith.addf %262, %267 : vector<8x128xf32>
    %c0_i32_66 = arith.constant 0 : i32
    %c1024_i32_67 = arith.constant 1024 : i32
    %269 = arith.muli %c0_i32_66, %c1024_i32_67 : i32
    %270 = arith.addi %5, %269 : i32
    %271 = vector.broadcast %270 : i32 to vector<8x128xi32>
    %272 = arith.addi %271, %4 : vector<8x128xi32>
    %c8_i32_68 = arith.constant 8 : i32
    %273 = vector.broadcast %c8_i32_68 : i32 to vector<8x128xi32>
    %274 = arith.cmpi slt, %272, %273 : vector<8x128xi32>
    %275 = arith.extui %274 : vector<8x128xi1> to vector<8x128xi32>
    %276 = arith.sitofp %275 : vector<8x128xi32> to vector<8x128xf32>
    %277 = arith.mulf %268, %276 : vector<8x128xf32>
    %278 = arith.addf %6, %277 : vector<8x128xf32>
    %c0_69 = arith.constant 0 : index
    %c0_70 = arith.constant 0 : index
    %c0_71 = arith.constant 0 : index
    %279 = vector.load %arg3[%c0_69, %c0_70, %c0_71] : memref<1x8x128xf32, #tpu.memory_space<vmem>>, vector<1x8x128xf32>
    %280 = vector.shape_cast %279 : vector<1x8x128xf32> to vector<8x128xf32>
    %281 = vector.shape_cast %278 : vector<8x128xf32> to vector<1x8x128xf32>
    tpu.vector_store %arg3[%c0_69, %c0_70, %c0_71], %281 {strides = array<i32>} : memref<1x8x128xf32, #tpu.memory_space<vmem>>, vector<1x8x128xf32>,
    return
  }
  func.func @transform_0(%arg0: i32) -> (i32, i32, i32, i32) {
    %c0_i32 = arith.constant 0 : i32
    %c0_i32_0 = arith.constant 0 : i32
    %c0_i32_1 = arith.constant 0 : i32
    %c0_i32_2 = arith.constant 0 : i32
    return %arg0, %c0_i32, %c0_i32_0, %c0_i32_1 : i32, i32, i32, i32
  }
  func.func @transform_1(%arg0: i32) -> (i32, i32, i32, i32) {
    %c0_i32 = arith.constant 0 : i32
    %c0_i32_0 = arith.constant 0 : i32
    %c0_i32_1 = arith.constant 0 : i32
    %c0_i32_2 = arith.constant 0 : i32
    return %arg0, %c0_i32, %c0_i32_0, %c0_i32_1 : i32, i32, i32, i32
  }
  func.func @transform_2(%arg0: i32) -> (i32, i32, i32) {
    %c0_i32 = arith.constant 0 : i32
    %c0_i32_0 = arith.constant 0 : i32
    %c0_i32_1 = arith.constant 0 : i32
    return %arg0, %c0_i32, %c0_i32_0 : i32, i32, i32
  }
}

</mosaic_0001>

<bundles_post_ra>
// kernel: tpu_custom_call.1
= control target key start
LH: loop header
LB: loop body
LE: loop exit
PB: predicated region body
PF: predicated region fallthrough
CT: control target
= control target key end

     0   :  { %7 = vsyncpa [#allocation3], 0  ;;  %s4128_s0 = inlined_call_operand.hbm [shape: f32[1,7,8,128], index: 0, kind: input, shape index: {}]   ;;  %s4129_s1 = inlined_call_operand.hbm [shape: f32[1,6,8,128], index: 1, kind: input, shape index: {}]   ;;  %s4130_s2 = inlined_call_operand.hbm [shape: f32[1,8,128], index: 2, kind: output, shape index: {}]  }
   0x1   :  { %8 = vsyncpa [#allocation6], 0 }
   0x2   :  { %9 = vsyncpa [#allocation4], 0  ;;  %s14_s11 = sshll.u32 %s4128_s0, 4  ;;  %s2788_s12 = smov [#allocation2]   ;;  %s15_s11 = int_to_ptr.hbm [resolvable:$true] %s14_s11 }
   0x3   :  { %s16_s13 = sshll.u32 %s2788_s12, 4  ;;  %s27_s16 = sshll.u32 %s4129_s1, 4  ;;  %s17_s13 = int_to_ptr.vmem [resolvable:$true] %s16_s13  ;;  %s28_s16 = int_to_ptr.hbm [resolvable:$true] %s27_s16 }
   0x4   :  { %s2789_s17 = smov 128   ;;  %s2790_s18 = smov 8  }
   0x5   :  { %22 = dma.hbm_to_vmem [thread:$0]  %s15_s11, 896, %s17_s13, [#allocation3], %s2789_s17, %s2789_s17, %s2790_s18  }
   0x6   :  { %s2791_s19 = smov [#allocation5]  }
   0x7   :  { %s29_s20 = sshll.u32 %s2791_s19, 4  ;;  %s30_s20 = int_to_ptr.vmem [resolvable:$true] %s29_s20 }
   0x8   :  { %35 = dma.hbm_to_vmem [thread:$0]  %s28_s16, 768, %s30_s20, [#allocation6], %s2789_s17, %s2789_s17, %s2790_s18  }
   0x9   :  { %2782 = dma.done.wait [#allocation3], 896  }
   0xa   :  { %2783 = vsyncadd [#allocation3], 4294966400 }
   0xb   :  { %2784 = dma.done.wait [#allocation6], 768  }
   0xc   :  { %2785 = vsyncadd [#allocation6], 4294966528  ;;  %v2823_v0 = vld [vmem:[#allocation2] sm:$0xff]  ;;  %v2825_v1 = vld [vmem:[#allocation2 + $0x8] sm:$0xff]  ;;  %v2792_v27 = vmov 683565275  }
   0xd   :  { %v52_v2 = vand.u32 2147483647, %v2823_v0  ;;  %v55_v3 = vand.u32 2139095040, %v2823_v0  ;;  %v2829_v4 = vld [vmem:[#allocation2 + $0x10] sm:$0xff]  ;;  %v365_v5 = vand.u32 2147483647, %v2825_v1 }
   0xe   :  { %v368_v6 = vand.u32 2139095040, %v2825_v1  ;;  %v692_v10 = vand.u32 2139095040, %v2829_v4  ;;  %v2793_v29 = vmov 2475754826   ;;  %v2794_v31 = vmov 2131351028  }
   0xf   :  { %v56_v7 = vshrl.u32 %v55_v3, 23  ;;  %v59_v8 = vand.u32 8388607, %v52_v2  ;;  %v372_v14 = vand.u32 8388607, %v365_v5  ;;  %s2801_s0 = smov [#allocation7]  }
  0x10   :  { %v369_v9 = vshrl.u32 %v368_v6, 23  ;;  %v693_v17 = vshrl.u32 %v692_v10, 23  ;;  %v2795_v33 = vmov 2102212464   ;;  %v2796_v35 = vmov 920167782  }
  0x11   :  { %v2641_v11 = vadd.s32 4294967169, %v56_v7  ;;  %v60_v12 = vor.u32 8388608, %v59_v8  ;;  %v373_v20 = vor.u32 8388608, %v372_v14  ;;  %v2797_v44 = vmov 1326507024   ;;  %s2617_s1 = sshll.u32 %s2801_s0, 4  ;;  %s2618_s1 = int_to_ptr.vmem [resolvable:$true] %s2617_s1 }
  0x12   :  { %v2647_v13 = vadd.s32 4294967169, %v369_v9  ;;  %v2844_v25 = vadd.s32 4294967169, %v693_v17  ;;  %s2619_s23 = sshll.u32 %s4130_s2, 4  ;;  %s2620_s23 = int_to_ptr.hbm [resolvable:$true] %s2619_s23 }
  0x13   :  { %v62_v15 = vadd.s32 1, %v2641_v11  ;;  %v2838_v19 = vshll.u32 %v60_v12, 8  ;;  %v2852_v38 = vshll.u32 %v373_v20, 8 }
  0x14   :  { %v375_v16 = vadd.s32 1, %v2647_v13 }
  0x15   :  { %vm63_vm0 = vcmp.gt.s32.totalorder %v62_v15, 0  ;;  %v101_v37 = vand.u32 65535, %v2838_v19  ;;  %v102_v42 = vshrl.u32 %v2838_v19, 16 }
  0x16   :  { %v64_v18 = vsel %vm63_vm0, %v62_v15, 0  ;;  %vm376_vm1 = vcmp.gt.s32.totalorder %v375_v16, 0 }
  0x17   :  { %v66_v21 = vand.u32 31, %v64_v18  ;;  %v377_v22 = vsel %vm376_vm1, %v375_v16, 0  ;;  %v2840_v23 = vshrl.u32 %v64_v18, 5 }
  0x18   :  { %v2842_v24 = vand.u32 31, %v377_v22  ;;  %v2872_v55 = vshrl.u32 %v377_v22, 5 }
  0x19   :  { %v67_v26 = vsub.s32 32, %v66_v21  ;;  %v69_v28 = vshll.u32 %v2792_v27, %v66_v21  ;;  %v72_v30 = vshll.u32 %v2793_v29, %v66_v21  ;;  %v75_v32 = vshll.u32 %v2794_v31, %v66_v21 }
  0x1a   :  { %v78_v34 = vshll.u32 %v2795_v33, %v66_v21  ;;  %v81_v36 = vshll.u32 %v2796_v35, %v66_v21  ;;  %vm84_vm2 = vcmp.lt.s32.totalorder %v2840_v23, 1  ;;  %vm87_vm3 = vcmp.lt.s32.totalorder %v2840_v23, 4 }
  0x1b   :  { %v70_v39 = vshrl.u32 %v2793_v29, %v67_v26  ;;  %v73_v40 = vshrl.u32 %v2794_v31, %v67_v26  ;;  %v76_v41 = vshrl.u32 %v2795_v33, %v67_v26  ;;  %v79_v43 = vshrl.u32 %v2796_v35, %v67_v26 }
  0x1c   :  { %v82_v45 = vshrl.u32 %v2797_v44, %v67_v26  ;;  %v2863_v49 = vsub.s32 32, %v2842_v24  ;;  %v68_v50 = vshrl.u32 %v2792_v27, %v67_v26  ;;  %vm86_vm4 = vcmp.lt.s32.totalorder %v2840_v23, 3 }
  0x1d   :  { %v71_v46 = vor.u32 %v70_v39, %v69_v28  ;;  %v74_v47 = vor.u32 %v73_v40, %v72_v30  ;;  %v77_v48 = vor.u32 %v76_v41, %v75_v32  ;;  %v80_v51 = vor.u32 %v79_v43, %v78_v34 }
  0x1e   :  { %v83_v52 = vor.u32 %v82_v45, %v81_v36  ;;  %vm85_vm5 = vcmp.lt.s32.totalorder %v2840_v23, 2  ;;  %v382_v58 = vshll.u32 %v2792_v27, %v2842_v24  ;;  %v385_v59 = vshll.u32 %v2793_v29, %v2842_v24 }
  0x1f   :  { %v92_v53 = vsel %vm84_vm2, %v71_v46, %v74_v47  ;;  %v96_v54 = vsel %vm84_vm2, %v74_v47, %v77_v48  ;;  %v93_v56 = vsel %vm87_vm3, %v80_v51, 920167782  ;;  %v89_v60 = vsel %vm87_vm3, %v77_v48, 2102212464 }
  0x20   :  { %v97_v57 = vsel %vm87_vm3, %v83_v52, 1326507024  ;;  %v94_v61 = vsel %vm86_vm4, %v77_v48, %v93_v56  ;;  %v383_v63 = vshrl.u32 %v2793_v29, %v2863_v49  ;;  %v88_v3 = vsel %vm84_vm2, %v68_v50, %v71_v46 }
  0x21   :  { %v98_v62 = vsel %vm86_vm4, %v80_v51, %v97_v57  ;;  %v95_v6 = vsel %vm85_vm5, %v92_v53, %v94_v61  ;;  %v386_v8 = vshrl.u32 %v2794_v31, %v2863_v49  ;;  %v90_v13 = vsel %vm86_vm4, %v74_v47, %v89_v60 }
  0x22   :  { %v99_v7 = vsel %vm85_vm5, %v96_v54, %v98_v62  ;;  %v125_v11 = vand.u32 65535, %v95_v6  ;;  %v126_v12 = vshrl.u32 %v95_v6, 16  ;;  %v2900_v14 = vor.u32 %v383_v63, %v382_v58 }
  0x23   :  { %v103_v9 = vand.u32 65535, %v99_v7  ;;  %v104_v10 = vshrl.u32 %v99_v7, 16  ;;  %v2902_v15 = vor.u32 %v386_v8, %v385_v59  ;;  %v388_v16 = vshll.u32 %v2794_v31, %v2842_v24 }
  0x24   :  { %v389_v21 = vshrl.u32 %v2795_v33, %v2863_v49  ;;  %v127_v26 = vmul.u32 %v125_v11, %v101_v37  ;;  %v128_v28 = vmul.u32 %v126_v12, %v101_v37  ;;  %v129_v30 = vmul.u32 %v125_v11, %v102_v42 }
  0x25   :  { %v105_v17 = vmul.u32 %v103_v9, %v101_v37  ;;  %v106_v18 = vmul.u32 %v104_v10, %v101_v37  ;;  %v107_v20 = vmul.u32 %v103_v9, %v102_v42  ;;  %v108_v22 = vmul.u32 %v104_v10, %v102_v42 }
  0x26   :  { %v130_v39 = vmul.u32 %v126_v12, %v102_v42  ;;  %v131_v41 = vshll.u32 %v128_v28, 16  ;;  %v132_v43 = vshrl.u32 %v128_v28, 16  ;;  %v133_v45 = vshll.u32 %v129_v30, 16 }
  0x27   :  { %v109_v32 = vshll.u32 %v106_v18, 16  ;;  %v110_v34 = vshrl.u32 %v106_v18, 16  ;;  %v111_v36 = vshll.u32 %v107_v20, 16  ;;  %v112_v40 = vshrl.u32 %v107_v20, 16 }
  0x28   :  { %v134_v47 = vshrl.u32 %v129_v30, 16  ;;  %v391_v48 = vshll.u32 %v2795_v33, %v2842_v24  ;;  %v2798_v50 = vmov 0   ;;  %vm135_vm7 = vc.u32 %v127_v26, %v131_v41 }
  0x29   :  { %vm113_vm6 = vc.u32 %v105_v17, %v109_v32  ;;  %v115_v46 = vadd.s32 %v109_v32, %v105_v17  ;;  %v137_v37 = vadd.s32 %v131_v41, %v127_v26  ;;  %v392_v52 = vshrl.u32 %v2796_v35, %v2863_v49 }
  0x2a   :  { %v114_v51 = vsel %vm113_vm6, 1, %v2798_v50  ;;  %v136_v42 = vsel %vm135_vm7, 1, %v2798_v50  ;;  %v394_v54 = vshll.u32 %v2796_v35, %v2842_v24  ;;  %v390_v58 = vor.u32 %v389_v21, %v388_v16 }
  0x2b   :  { %v116_v53 = vadd.s32 %v114_v51, %v108_v22  ;;  %vm117_vm8 = vc.u32 %v115_v46, %v111_v36  ;;  %v138_v57 = vadd.s32 %v136_v42, %v130_v39  ;;  %vm139_vm9 = vc.u32 %v137_v37, %v133_v45 }
  0x2c   :  { %v118_v56 = vsel %vm117_vm8, 1, %v2798_v50  ;;  %v140_v60 = vsel %vm139_vm9, 1, %v2798_v50  ;;  %v393_v61 = vor.u32 %v392_v52, %v391_v48  ;;  %v395_v62 = vshrl.u32 %v2797_v44, %v2863_v49 }
  0x2d   :  { %v120_v59 = vadd.s32 %v118_v56, %v116_v53  ;;  %v2920_v63 = vadd.s32 %v137_v37, %v133_v45  ;;  %v142_v6 = vadd.s32 %v140_v60, %v138_v57  ;;  %vm397_vm10 = vcmp.lt.s32.totalorder %v2872_v55, 1 }
  0x2e   :  { %vm399_vm11 = vcmp.lt.s32.totalorder %v2872_v55, 3  ;;  %v396_v7 = vor.u32 %v395_v62, %v394_v54  ;;  %vm398_vm12 = vcmp.lt.s32.totalorder %v2872_v55, 2  ;;  %vm400_vm13 = vcmp.lt.s32.totalorder %v2872_v55, 4 }
  0x2f   :  { %v121_v24 = vadd.s32 %v120_v59, %v110_v34  ;;  %v91_v8 = vsel %vm85_vm5, %v88_v3, %v90_v13  ;;  %v143_v9 = vadd.s32 %v142_v6, %v132_v43  ;;  %v405_v10 = vsel %vm397_vm10, %v2900_v14, %v2902_v15 }
  0x30   :  { %v406_v11 = vsel %vm400_vm13, %v393_v61, 920167782  ;;  %v409_v17 = vsel %vm397_vm10, %v2902_v15, %v390_v58  ;;  %v414_v23 = vand.u32 65535, %v2852_v38  ;;  %v410_v18 = vsel %vm400_vm13, %v396_v7, 1326507024 }
  0x31   :  { %v2934_v12 = vadd.s32 %v121_v24, %v112_v40  ;;  %v407_v16 = vsel %vm399_vm11, %v390_v58, %v406_v11  ;;  %v144_v3 = vadd.s32 %v143_v9, %v134_v47  ;;  %v415_v20 = vshrl.u32 %v2852_v38, 16 }
  0x32   :  { %v408_v13 = vsel %vm398_vm12, %v405_v10, %v407_v16  ;;  %v145_v21 = vmul.u32 %v2838_v19, %v91_v8  ;;  %v411_v22 = vsel %vm399_vm11, %v393_v61, %v410_v18  ;;  %v699_v34 = vadd.s32 1, %v2844_v25 }
  0x33   :  { %vm147_vm14 = vc.u32 %v2934_v12, %v2920_v63  ;;  %v438_v26 = vand.u32 65535, %v408_v13  ;;  %v148_v28 = vadd.s32 1, %v144_v3  ;;  %v412_v30 = vsel %vm398_vm12, %v409_v17, %v411_v22 }
  0x34   :  { %v439_v32 = vshrl.u32 %v408_v13, 16  ;;  %v381_v36 = vshrl.u32 %v2792_v27, %v2863_v49  ;;  %v416_v39 = vand.u32 65535, %v412_v30  ;;  %v417_v40 = vshrl.u32 %v412_v30, 16 }
  0x35   :  { %v149_v19 = vsel %vm147_vm14, %v148_v28, %v144_v3  ;;  %v440_v41 = vmul.u32 %v438_v26, %v414_v23  ;;  %v442_v45 = vmul.u32 %v438_v26, %v415_v20  ;;  %vm700_vm15 = vcmp.gt.s32.totalorder %v699_v34, 0 }
  0x36   :  { %v441_v43 = vmul.u32 %v439_v32, %v414_v23  ;;  %v150_v46 = vadd.s32 %v149_v19, %v145_v21  ;;  %v418_v47 = vmul.u32 %v416_v39, %v414_v23  ;;  %v419_v48 = vmul.u32 %v417_v40, %v414_v23 }
  0x37   :  { %v420_v51 = vmul.u32 %v416_v39, %v415_v20  ;;  %v402_v53 = vsel %vm400_vm13, %v390_v58, 2102212464  ;;  %v421_v25 = vmul.u32 %v417_v40, %v415_v20  ;;  %v401_v49 = vsel %vm397_vm10, %v381_v36, %v2900_v14 }
  0x38   :  { %v444_v37 = vshll.u32 %v441_v43, 16  ;;  %v151_v52 = vadd.s32 536870912, %v150_v46  ;;  %v422_v42 = vshll.u32 %v419_v48, 16  ;;  %v443_v56 = vmul.u32 %v439_v32, %v415_v20 }
  0x39   :  { %v424_v54 = vshll.u32 %v420_v51, 16  ;;  %v446_v57 = vshll.u32 %v442_v45, 16  ;;  %v403_v61 = vsel %vm399_vm11, %v2902_v15, %v402_v53  ;;  %v423_v14 = vshrl.u32 %v419_v48, 16 }
  0x3a   :  { %v2962_v59 = vshrl.u32 %v151_v52, 30  ;;  %vm426_vm0 = vc.u32 %v418_v47, %v422_v42  ;;  %v428_v60 = vadd.s32 %v422_v42, %v418_v47  ;;  %vm448_vm1 = vc.u32 %v440_v41, %v444_v37 }
  0x3b   :  { %v427_v58 = vsel %vm426_vm0, 1, %v2798_v50  ;;  %v449_v62 = vsel %vm448_vm1, 1, %v2798_v50  ;;  %v450_v6 = vadd.s32 %v444_v37, %v440_v41  ;;  %v445_v9 = vshrl.u32 %v441_v43, 16 }
  0x3c   :  { %v153_v24 = vshll.u32 %v2962_v59, 30  ;;  %v429_v7 = vadd.s32 %v427_v58, %v421_v25  ;;  %vm430_vm2 = vc.u32 %v428_v60, %v424_v54  ;;  %v451_v10 = vadd.s32 %v449_v62, %v443_v56 }
  0x3d   :  { %v431_v8 = vsel %vm430_vm2, 1, %v2798_v50  ;;  %vm452_vm3 = vc.u32 %v450_v6, %v446_v57  ;;  %v425_v16 = vshrl.u32 %v420_v51, 16  ;;  %v447_v23 = vshrl.u32 %v442_v45, 16 }
  0x3e   :  { %v154_v11 = vsub.s32 %v150_v46, %v153_v24  ;;  %v433_v17 = vadd.s32 %v431_v8, %v429_v7  ;;  %v453_v15 = vsel %vm452_vm3, 1, %v2798_v50  ;;  %v701_v13 = vsel %vm700_vm15, %v699_v34, 0 }
  0x3f   :  { %v455_v3 = vadd.s32 %v453_v15, %v451_v10  ;;  %v2973_v21 = vadd.s32 %v450_v6, %v446_v57  ;;  %v404_v22 = vsel %vm398_vm12, %v401_v49, %v403_v61  ;;  %v689_v32 = vand.u32 2147483647, %v2829_v4 }
  0x40   :  { %vm155_vm4 = vcmp.lt.s32.totalorder %v154_v11, 0  ;;  %v156_v18 = vsub.s32 0, %v154_v11  ;;  %v434_v20 = vadd.s32 %v433_v17, %v423_v14  ;;  %v703_v36 = vand.u32 31, %v701_v13 }
  0x41   :  { %v456_v26 = vadd.s32 %v455_v3, %v445_v9  ;;  %v458_v19 = vmul.u32 %v2852_v38, %v404_v22  ;;  %v696_v55 = vand.u32 8388607, %v689_v32  ;;  %v146_v45 = vadd.s32 %v2920_v63, %v2934_v12 }
  0x42   :  { %v157_v28 = vsel %vm155_vm4, %v156_v18, %v154_v11  ;;  %v2977_v30 = vadd.s32 %v434_v20, %v425_v16  ;;  %v2985_v43 = vsub.s32 32, %v703_v36  ;;  %v2989_v47 = vshrl.u32 %v701_v13, 5 }
  0x43   :  { %v158_v39 = vclz %v157_v28  ;;  %v457_v40 = vadd.s32 %v456_v26, %v447_v23  ;;  %v709_v38 = vshll.u32 %v2793_v29, %v703_v36  ;;  %v712_v37 = vshll.u32 %v2794_v31, %v703_v36 }
  0x44   :  { %vm460_vm5 = vc.u32 %v2977_v30, %v2973_v21  ;;  %v715_v42 = vshll.u32 %v2795_v33, %v703_v36  ;;  %v710_v54 = vshrl.u32 %v2794_v31, %v2985_v43  ;;  %v713_v63 = vshrl.u32 %v2795_v33, %v2985_v43 }
  0x45   :  { %v2642_v34 = vadd.s32 4294967294, %v158_v39  ;;  %v461_v41 = vadd.s32 1, %v457_v40  ;;  %v716_v12 = vshrl.u32 %v2796_v35, %v2985_v43  ;;  %v718_v60 = vshll.u32 %v2796_v35, %v703_v36 }
  0x46   :  { %v706_v58 = vshll.u32 %v2792_v27, %v703_v36  ;;  %v707_v62 = vshrl.u32 %v2793_v29, %v2985_v43  ;;  %v719_v6 = vshrl.u32 %v2797_v44, %v2985_v43  ;;  %v697_v7 = vor.u32 8388608, %v696_v55 }
  0x47   :  { %vm2643_vm6 = vcmp.lt.s32.totalorder %v2642_v34, 0  ;;  %v462_v46 = vsel %vm460_vm5, %v461_v41, %v457_v40  ;;  %vm721_vm7 = vcmp.lt.s32.totalorder %v2989_v47, 1  ;;  %v3010_v9 = vor.u32 %v710_v54, %v709_v38 }
  0x48   :  { %v161_v48 = vsel %vm2643_vm6, 0, %v2642_v34  ;;  %v463_v51 = vadd.s32 %v462_v46, %v458_v19  ;;  %v3012_v10 = vor.u32 %v713_v63, %v712_v37  ;;  %v720_v15 = vor.u32 %v719_v6, %v718_v60 }
  0x49   :  { %v162_v52 = vsub.s32 32, %v161_v48  ;;  %v163_v53 = vshll.u32 %v154_v11, %v161_v48  ;;  %v166_v25 = vsub.s32 4294967266, %v161_v48  ;;  %v717_v11 = vor.u32 %v716_v12, %v715_v42 }
  0x4a   :  { %v464_v49 = vadd.s32 536870912, %v463_v51  ;;  %vm724_vm8 = vcmp.lt.s32.totalorder %v2989_v47, 4  ;;  %v3015_v3 = vor.u32 %v707_v62, %v706_v58  ;;  %vm722_vm9 = vcmp.lt.s32.totalorder %v2989_v47, 2 }
  0x4b   :  { %v164_v56 = vshrl.u32 %v146_v45, %v162_v52  ;;  %v167_v57 = vadd.s32 127, %v166_v25  ;;  %vm723_vm10 = vcmp.lt.s32.totalorder %v2989_v47, 3  ;;  %v730_v20 = vsel %vm724_vm8, %v717_v11, 920167782 }
  0x4c   :  { %v3001_v61 = vshrl.u32 %v464_v49, 30  ;;  %v733_v22 = vsel %vm721_vm7, %v3010_v9, %v3012_v10  ;;  %v734_v28 = vsel %vm724_vm8, %v720_v15, 1326507024  ;;  %v3027_v36 = vshll.u32 %v697_v7, 8 }
  0x4d   :  { %v165_v24 = vor.u32 %v164_v56, %v163_v53  ;;  %v168_v14 = vshll.u32 %v167_v57, 23  ;;  %v729_v40 = vsel %vm721_vm7, %v3015_v3, %v3010_v9  ;;  %v735_v19 = vsel %vm723_vm10, %v717_v11, %v734_v28 }
  0x4e   :  { %v466_v8 = vshll.u32 %v3001_v61, 30  ;;  %v731_v41 = vsel %vm723_vm10, %v3012_v10, %v730_v20  ;;  %v736_v55 = vsel %vm722_vm9, %v733_v22, %v735_v19  ;;  %v738_v45 = vand.u32 65535, %v3027_v36 }
  0x4f   :  { %v169_v16 = vor.u32 4788187, %v168_v14  ;;  %v172_v17 = vcvt.s32.f32 %v165_v24  ;;  %v741_v46 = vshrl.u32 %v736_v55, 16  ;;  %vm54_vm12 = vcmp.lt.s32.totalorder %v2823_v0, 0 }
  0x50   :  { %v467_v23 = vsub.s32 %v463_v51, %v466_v8  ;;  %v732_v38 = vsel %vm722_vm9, %v729_v40, %v731_v41  ;;  %v739_v37 = vshrl.u32 %v3027_v36, 16  ;;  %v740_v52 = vand.u32 65535, %v736_v55  ;;  %v3071_v41 = vld [vmem:[#allocation2 + $0x18] sm:$0xff] }
  0x51   :  { %v170_v13 = vand.u32 2147483647, %v169_v16  ;;  %v743_v53 = vmul.u32 %v741_v46, %v738_v45  ;;  %v459_v25 = vadd.s32 %v2973_v21, %v2977_v30  ;;  %vm3049_vm14 = vcmp.le.f32.partialorder %v52_v2, 0.7853982 }
  0x52   :  { %vm468_vm11 = vcmp.lt.s32.totalorder %v467_v23, 0  ;;  %v469_v18 = vsub.s32 0, %v467_v23  ;;  %v763_v56 = vshrl.u32 %v732_v38, 16  ;;  %v742_v60 = vmul.u32 %v740_v52, %v738_v45 }
  0x53   :  { %v173_v26 = vmul.f32 %v172_v17, %v170_v13  ;;  %v744_v58 = vmul.u32 %v740_v52, %v739_v37  ;;  %v746_v62 = vshll.u32 %v743_v53, 16  ;;  %v762_v21 = vand.u32 65535, %v732_v38 }
  0x54   :  { %v470_v39 = vsel %vm468_vm11, %v469_v18, %v467_v23  ;;  %v745_v24 = vmul.u32 %v741_v46, %v739_v37  ;;  %v765_v7 = vmul.u32 %v763_v56, %v738_v45  ;;  %v705_v11 = vshrl.u32 %v2792_v27, %v2985_v43 }
  0x55   :  { %v471_v34 = vclz %v470_v39  ;;  %v174_v48 = vxor.u32 2147483648, %v173_v26  ;;  %v748_v16 = vshll.u32 %v744_v58, 16  ;;  %vm750_vm15 = vc.u32 %v742_v60, %v746_v62 }
  0x56   :  { %v764_v13 = vmul.u32 %v762_v21, %v738_v45  ;;  %v752_v20 = vadd.s32 %v746_v62, %v742_v60  ;;  %vm367_vm0 = vcmp.lt.s32.totalorder %v2825_v1, 0  ;;  %v726_v43 = vsel %vm724_vm8, %v3012_v10, 2102212464 }
  0x57   :  { %v2648_v51 = vadd.s32 4294967294, %v471_v34  ;;  %v175_v54 = vsel %vm54_vm12, %v174_v48, %v173_v26  ;;  %v766_v26 = vmul.u32 %v762_v21, %v739_v37  ;;  %v747_v28 = vshrl.u32 %v743_v53, 16 }
  0x58   :  { %v3058_v2 = vsel %vm3049_vm14, %v2823_v0, %v175_v54  ;;  %v768_v39 = vshll.u32 %v765_v7, 16  ;;  %vm754_vm1 = vc.u32 %v752_v20, %v748_v16  ;;  %v767_v19 = vmul.u32 %v763_v56, %v739_v37 }
  0x59   :  { %vm2649_vm13 = vcmp.lt.s32.totalorder %v2648_v51, 0  ;;  %v3064_v17 = vmul.f32 %v3058_v2, %v3058_v2  ;;  %v770_v34 = vshll.u32 %v766_v26, 16  ;;  %v725_v46 = vsel %vm721_vm7, %v705_v11, %v3015_v3 }
  0x5a   :  { %v474_v49 = vsel %vm2649_vm13, 0, %v2648_v51  ;;  %v755_v48 = vsel %vm754_vm1, 1, %v2798_v50  ;;  %vm772_vm2 = vc.u32 %v764_v13, %v768_v39  ;;  %v774_v38 = vadd.s32 %v768_v39, %v764_v13 }
  0x5b   :  { %v475_v63 = vsub.s32 32, %v474_v49  ;;  %v476_v12 = vshll.u32 %v467_v23, %v474_v49  ;;  %v479_v57 = vsub.s32 4294967266, %v474_v49  ;;  %v751_v23 = vsel %vm750_vm15, 1, %v2798_v50 }
  0x5c   :  { %v753_v22 = vadd.s32 %v751_v23, %v745_v24  ;;  %v181_v55 = vmul.f32 -0.001358992, %v3064_v17  ;;  %v188_v45 = vmul.f32 -0.00019511016, %v3064_v17  ;;  %v749_v52 = vshrl.u32 %v744_v58, 16 }
  0x5d   :  { %v477_v6 = vshrl.u32 %v459_v25, %v475_v63  ;;  %v480_v30 = vadd.s32 127, %v479_v57  ;;  %v769_v53 = vshrl.u32 %v765_v7, 16  ;;  %v773_v37 = vsel %vm772_vm2, 1, %v2798_v50 }
  0x5e   :  { %v757_v10 = vadd.s32 %v755_v48, %v753_v22  ;;  %v1013_v25 = vand.u32 2139095040, %v3071_v41  ;;  %v775_v63 = vadd.s32 %v773_v37, %v767_v19  ;;  %vm776_vm3 = vc.u32 %v774_v38, %v770_v34 }
  0x5f   :  { %v478_v14 = vor.u32 %v477_v6, %v476_v12  ;;  %v481_v8 = vshll.u32 %v480_v30, 23  ;;  %v182_v12 = vadd.f32 0.041655596, %v181_v55  ;;  %v189_v56 = vadd.f32 0.008332121, %v188_v45 }
  0x60   :  { %v758_v54 = vadd.s32 %v757_v10, %v747_v28  ;;  %v727_v3 = vsel %vm723_vm10, %v3010_v9, %v726_v43  ;;  %v777_v57 = vsel %vm776_vm3, 1, %v2798_v50  ;;  %v176_v60 = vsub.s32 4, %v2962_v59 }
  0x61   :  { %v485_v15 = vcvt.s32.f32 %v478_v14  ;;  %v482_v18 = vor.u32 4788187, %v481_v8  ;;  %v771_v58 = vshrl.u32 %v766_v26, 16  ;;  %v779_v62 = vadd.s32 %v777_v57, %v775_v63 }
  0x62   :  { %v3086_v6 = vadd.s32 %v758_v54, %v749_v52  ;;  %v3088_v21 = vadd.s32 %v774_v38, %v770_v34  ;;  %v1014_v30 = vshrl.u32 %v1013_v25, 23  ;;  %vm3092_vm4 = vcmp.le.f32.partialorder %v365_v5, 0.7853982  ;;  %v3141_v54 = vld [vmem:[#allocation2 + $0x20] sm:$0xff] }
  0x63   :  { %v483_v40 = vand.u32 2147483647, %v482_v18  ;;  %v728_v14 = vsel %vm722_vm9, %v725_v46, %v727_v3  ;;  %v780_v7 = vadd.s32 %v779_v62, %v769_v53  ;;  %v183_v8 = vmul.f32 %v182_v12, %v3064_v17 }
  0x64   :  { %v190_v11 = vmul.f32 %v189_v56, %v3064_v17  ;;  %v177_v16 = vsel %vm54_vm12, %v176_v60, %v2962_v59  ;;  %v782_v23 = vmul.u32 %v3027_v36, %v728_v14  ;;  %vm784_vm5 = vc.u32 %v3086_v6, %v3088_v21 }
  0x65   :  { %v486_v51 = vmul.f32 %v485_v15, %v483_v40  ;;  %v781_v15 = vadd.s32 %v780_v7, %v771_v58  ;;  %v2659_v47 = vadd.s32 4294967169, %v1014_v30  ;;  %v179_v18 = vsel %vm3049_vm14, 0, %v177_v16 }
  0x66   :  { %v184_v20 = vadd.f32 -0.4999988, %v183_v8  ;;  %v191_v22 = vadd.f32 -0.16666654, %v190_v11  ;;  %v489_v59 = vsub.s32 4, %v3001_v61  ;;  %v350_v36 = vadd.s32 3, %v179_v18 }
  0x67   :  { %v487_v49 = vxor.u32 2147483648, %v486_v51  ;;  %v785_v13 = vadd.s32 1, %v781_v15  ;;  %v1020_v26 = vadd.s32 1, %v2659_v47  ;;  %v1010_v25 = vand.u32 2147483647, %v3071_v41 }
  0x68   :  { %v185_v40 = vmul.f32 %v184_v20, %v3064_v17  ;;  %v192_v19 = vmul.f32 %v191_v22, %v3064_v17  ;;  %v490_v55 = vsel %vm367_vm0, %v489_v59, %v3001_v61  ;;  %v3131_v10 = vand.u32 3, %v350_v36 }
  0x69   :  { %v488_v9 = vsel %vm367_vm0, %v487_v49, %v486_v51  ;;  %v786_v28 = vsel %vm784_vm5, %v785_v13, %v781_v15  ;;  %vm1021_vm6 = vcmp.gt.s32.totalorder %v1020_v26, 0  ;;  %v3129_v51 = vand.u32 3, %v179_v18 }
  0x6a   :  { %v3108_v5 = vsel %vm3092_vm4, %v2825_v1, %v488_v9  ;;  %v787_v39 = vadd.s32 %v786_v28, %v782_v23  ;;  %v1022_v42 = vsel %vm1021_vm6, %v1020_v26, 0  ;;  %v3133_v52 = vadd.f32 1.0, %v185_v40 }
  0x6b   :  { %v3118_v43 = vmul.f32 %v3108_v5, %v3108_v5  ;;  %v1024_v38 = vand.u32 31, %v1022_v42  ;;  %v193_v17 = vadd.f32 1.0, %v192_v19  ;;  %v492_v53 = vsel %vm3092_vm4, 0, %v490_v55 }
  0x6c   :  { %v788_v34 = vadd.s32 536870912, %v787_v39  ;;  %vm201_vm7 = vcmp.eq.s32.totalorder %v3129_v51, 2  ;;  %v3144_v63 = vand.u32 3, %v492_v53  ;;  %v663_v12 = vadd.s32 3, %v492_v53 }
  0x6d   :  { %v494_v45 = vmul.f32 -0.001358992, %v3118_v43  ;;  %v501_v46 = vmul.f32 -0.00019511016, %v3118_v43  ;;  %v3146_v56 = vsub.s32 32, %v1024_v38  ;;  %v194_v3 = vmul.f32 %v193_v17, %v3058_v2 }
  0x6e   :  { %v3127_v48 = vshrl.u32 %v788_v34, 30  ;;  %v202_v57 = vxor.u32 2147483648, %v3133_v52  ;;  %vm356_vm8 = vcmp.eq.s32.totalorder %v3131_v10, 2  ;;  %v1017_v30 = vand.u32 8388607, %v1010_v25 }
  0x6f   :  { %v495_v61 = vadd.f32 0.041655596, %v494_v45  ;;  %v502_v37 = vadd.f32 0.008332121, %v501_v46  ;;  %v1352_v24 = vand.u32 2139095040, %v3141_v54  ;;  %vm198_vm10 = vcmp.eq.s32.totalorder %v3129_v51, 0 }
  0x70   :  { %v790_v1 = vshll.u32 %v3127_v48, 30  ;;  %v1027_v9 = vshll.u32 %v2792_v27, %v1024_v38  ;;  %v1030_v14 = vshll.u32 %v2793_v29, %v1024_v38  ;;  %v1033_v7 = vshll.u32 %v2794_v31, %v1024_v38 }
  0x71   :  { %v496_v58 = vmul.f32 %v495_v61, %v3118_v43  ;;  %v503_v62 = vmul.f32 %v502_v37, %v3118_v43  ;;  %vm353_vm11 = vcmp.eq.s32.totalorder %v3131_v10, 0  ;;  %v1028_v11 = vshrl.u32 %v2793_v29, %v3146_v56 }
  0x72   :  { %v3139_v49 = vsub.s32 %v787_v39, %v790_v1  ;;  %v1031_v16 = vshrl.u32 %v2794_v31, %v3146_v56  ;;  %v1034_v15 = vshrl.u32 %v2795_v33, %v3146_v56  ;;  %v199_v23 = vxor.u32 2147483648, %v194_v3 }
  0x73   :  { %v3170_v47 = vand.u32 3, %v663_v12  ;;  %v1036_v13 = vshll.u32 %v2795_v33, %v1024_v38  ;;  %v1037_v18 = vshrl.u32 %v2796_v35, %v3146_v56  ;;  %v203_v20 = vsel %vm201_vm7, %v202_v57, %v194_v3 }
  0x74   :  { %vm792_vm9 = vcmp.lt.s32.totalorder %v3139_v49, 0  ;;  %v793_v60 = vsub.s32 0, %v3139_v49  ;;  %v783_v22 = vadd.s32 %v3088_v21, %v3086_v6  ;;  %v3179_v59 = vshrl.u32 %v1022_v42, 5 }
  0x75   :  { %vm197_vm12 = vcmp.lt.s32.totalorder %v3129_v51, 2  ;;  %v497_v28 = vadd.f32 -0.4999988, %v496_v58  ;;  %v504_v39 = vadd.f32 -0.16666654, %v503_v62  ;;  %v1018_v36 = vor.u32 8388608, %v1017_v30 }
  0x76   :  { %v794_v2 = vsel %vm792_vm9, %v793_v60, %v3139_v49  ;;  %v1353_v40 = vshrl.u32 %v1352_v24, 23  ;;  %v3182_v19 = vor.u32 %v1028_v11, %v1027_v9  ;;  %v3184_v34 = vor.u32 %v1031_v16, %v1030_v14 }
  0x77   :  { %v795_v8 = vclz %v794_v2  ;;  %v1035_v55 = vor.u32 %v1034_v15, %v1033_v7  ;;  %v1038_v46 = vor.u32 %v1037_v18, %v1036_v13  ;;  %v1039_v17 = vshll.u32 %v2796_v35, %v1024_v38 }
  0x78   :  { %v1040_v6 = vshrl.u32 %v2797_v44, %v3146_v56  ;;  %vm1042_vm14 = vcmp.lt.s32.totalorder %v3179_v59, 1  ;;  %v505_v1 = vmul.f32 %v504_v39, %v3118_v43  ;;  %vm1044_vm15 = vcmp.lt.s32.totalorder %v3179_v59, 3 }
  0x79   :  { %v2654_v26 = vadd.s32 4294967294, %v795_v8  ;;  %vm1045_vm0 = vcmp.lt.s32.totalorder %v3179_v59, 4  ;;  %v3194_v61 = vshll.u32 %v1018_v36, 8  ;;  %v3198_v38 = vsel %vm356_vm8, %v202_v57, %v194_v3 }
  0x7a   :  { %v498_v37 = vmul.f32 %v497_v28, %v3118_v43  ;;  %vm1043_vm1 = vcmp.lt.s32.totalorder %v3179_v59, 2  ;;  %v1050_v58 = vsel %vm1042_vm14, %v3182_v19, %v3184_v34  ;;  %v1051_v62 = vsel %vm1045_vm0, %v1038_v46, 920167782 }
  0x7b   :  { %vm2655_vm13 = vcmp.lt.s32.totalorder %v2654_v26, 0  ;;  %v200_v3 = vsel %vm198_vm10, %v3133_v52, %v199_v23  ;;  %v1052_v43 = vsel %vm1044_vm15, %v1035_v55, %v1051_v62  ;;  %v3216_v24 = vsel %vm353_vm11, %v3133_v52, %v199_v23 }
  0x7c   :  { %v798_v45 = vsel %vm2655_vm13, 0, %v2654_v26  ;;  %v506_v2 = vadd.f32 1.0, %v505_v1  ;;  %v1059_v9 = vand.u32 65535, %v3194_v61  ;;  %v2665_v14 = vadd.s32 4294967169, %v1353_v40 }
  0x7d   :  { %v799_v21 = vsub.s32 32, %v798_v45  ;;  %v800_v42 = vshll.u32 %v3139_v49, %v798_v45  ;;  %v803_v53 = vsub.s32 4294967266, %v798_v45  ;;  %v1041_v49 = vor.u32 %v1040_v6, %v1039_v17 }
  0x7e   :  { %v3219_v7 = vadd.f32 1.0, %v498_v37  ;;  %vm691_vm2 = vcmp.lt.s32.totalorder %v2829_v4, 0  ;;  %v1053_v16 = vsel %vm1043_vm1, %v1050_v58, %v1052_v43  ;;  %v1054_v15 = vsel %vm1042_vm14, %v3184_v34, %v1035_v55 }
  0x7f   :  { %v801_v12 = vshrl.u32 %v783_v22, %v799_v21  ;;  %v804_v60 = vadd.s32 127, %v803_v53  ;;  %v1055_v52 = vsel %vm1045_vm0, %v1041_v49, 1326507024  ;;  %v1060_v23 = vshrl.u32 %v3194_v61, 16 }
  0x80   :  { %v1083_v13 = vand.u32 65535, %v1053_v16  ;;  %v204_v18 = vsel %vm197_vm12, %v200_v3, %v203_v20  ;;  %v1056_v26 = vsel %vm1044_vm15, %v1038_v46, %v1055_v52  ;;  %v1084_v28 = vshrl.u32 %v1053_v16, 16 }
  0x81   :  { %v802_v57 = vor.u32 %v801_v12, %v800_v42  ;;  %v805_v30 = vshll.u32 %v804_v60, 23  ;;  %v3235_v39 = vmul.f32 %v506_v2, %v3108_v5  ;;  %vm3239_vm3 = vcmp.le.f32.partialorder %v689_v32, 0.7853982 }
  0x82   :  { %v1057_v40 = vsel %vm1043_vm1, %v1054_v15, %v1056_v26  ;;  %v3245_v45 = vmul.u32 %v1083_v13, %v1060_v23  ;;  %v1359_v51 = vadd.s32 1, %v2665_v14  ;;  %vm352_vm4 = vcmp.lt.s32.totalorder %v3131_v10, 2 }
  0x83   :  { %v806_v8 = vor.u32 4788187, %v805_v30  ;;  %v809_v11 = vcvt.s32.f32 %v802_v57  ;;  %v1061_v46 = vand.u32 65535, %v1057_v40  ;;  %v1062_v17 = vshrl.u32 %v1057_v40, 16 }
  0x84   :  { %v1086_v6 = vmul.u32 %v1084_v28, %v1059_v9  ;;  %v515_v5 = vxor.u32 2147483648, %v3219_v7  ;;  %v1026_v32 = vshrl.u32 %v2792_v27, %v3146_v56  ;;  %v1047_v21 = vsel %vm1045_vm0, %v1035_v55, 2102212464 }
  0x85   :  { %v807_v22 = vand.u32 2147483647, %v806_v8  ;;  %v1085_v42 = vmul.u32 %v1083_v13, %v1059_v9  ;;  %vm195_vm5 = vweird.f32 %v2823_v0  ;;  %vm514_vm6 = vcmp.eq.s32.totalorder %v3144_v63, 2 }
  0x86   :  { %v1063_v53 = vmul.u32 %v1061_v46, %v1059_v9  ;;  %v1064_v1 = vmul.u32 %v1062_v17, %v1059_v9  ;;  %v1065_v37 = vmul.u32 %v1061_v46, %v1060_v23  ;;  %v1088_v12 = vmul.u32 %v1084_v28, %v1060_v23 }
  0x87   :  { %v810_v20 = vmul.f32 %v809_v11, %v807_v22  ;;  %vm511_vm7 = vcmp.eq.s32.totalorder %v3144_v63, 0  ;;  %v1089_v49 = vshll.u32 %v1086_v6, 16  ;;  %v1091_v58 = vshll.u32 %v3245_v45, 16 }
  0x88   :  { %vm1360_vm8 = vcmp.gt.s32.totalorder %v1359_v51, 0  ;;  %v512_v56 = vxor.u32 2147483648, %v3235_v39  ;;  %v1066_v62 = vmul.u32 %v1062_v17, %v1060_v23  ;;  %v1067_v55 = vshll.u32 %v1064_v1, 16 }
  0x89   :  { %v811_v60 = vxor.u32 2147483648, %v810_v20  ;;  %v1069_v3 = vshll.u32 %v1065_v37, 16  ;;  %v1046_v57 = vsel %vm1042_vm14, %v1026_v32, %v3182_v19  ;;  %v1048_v30 = vsel %vm1044_vm15, %v3184_v34, %v1047_v21  ;;  %v2707_v21 = vld [vmem:[#allocation2 + $0x8] sm:$0xff] }
  0x8a   :  { %vm1093_vm9 = vc.u32 %v1085_v42, %v1089_v49  ;;  %v1095_v43 = vadd.s32 %v1089_v49, %v1085_v42  ;;  %vm1071_vm10 = vc.u32 %v1063_v53, %v1067_v55  ;;  %v1073_v2 = vadd.s32 %v1067_v55, %v1063_v53 }
  0x8b   :  { %v1094_v9 = vsel %vm1093_vm9, 1, %v2798_v50  ;;  %v1361_v14 = vsel %vm1360_vm8, %v1359_v51, 0  ;;  %v812_v8 = vsel %vm691_vm2, %v811_v60, %v810_v20  ;;  %v1072_v11 = vsel %vm1071_vm10, 1, %v2798_v50 }
  0x8c   :  { %v1096_v16 = vadd.s32 %v1094_v9, %v1088_v12  ;;  %vm1097_vm11 = vc.u32 %v1095_v43, %v1091_v58  ;;  %v1068_v15 = vshrl.u32 %v1064_v1, 16  ;;  %v1074_v19 = vadd.s32 %v1072_v11, %v1066_v62 }
  0x8d   :  { %vm1075_vm12 = vc.u32 %v1073_v2, %v1069_v3  ;;  %v1090_v52 = vshrl.u32 %v1086_v6, 16  ;;  %v1092_v23 = vshrl.u32 %v3245_v45, 16  ;;  %v1098_v13 = vsel %vm1097_vm11, 1, %v2798_v50 }
  0x8e   :  { %v1076_v34 = vsel %vm1075_vm12, 1, %v2798_v50  ;;  %v1363_v22 = vand.u32 31, %v1361_v14  ;;  %vm510_vm13 = vcmp.lt.s32.totalorder %v3144_v63, 2  ;;  %vm665_vm14 = vcmp.lt.s32.totalorder %v3170_v47, 2 }
  0x8f   :  { %v3276_v26 = vsel %vm3239_vm3, %v2829_v4, %v812_v8  ;;  %v1070_v28 = vshrl.u32 %v1065_v37, 16  ;;  %v1078_v40 = vadd.s32 %v1076_v34, %v1074_v19  ;;  %v1100_v51 = vadd.s32 %v1098_v13, %v1096_v16 }
  0x90   :  { %v3280_v20 = vsel %vm195_vm5, nan, %v204_v18  ;;  %v359_v45 = vsel %vm352_vm4, %v3216_v24, %v3198_v38  ;;  %vm666_vm15 = vcmp.eq.s32.totalorder %v3170_v47, 0  ;;  %vm669_vm0 = vcmp.eq.s32.totalorder %v3170_v47, 2 }
  0x91   :  { %v1049_v46 = vsel %vm1043_vm1, %v1046_v57, %v1048_v30  ;;  %v1079_v17 = vadd.s32 %v1078_v40, %v1068_v15  ;;  %v3290_v6 = vadd.s32 %v1095_v43, %v1091_v58  ;;  %v1101_v32 = vadd.s32 %v1100_v51, %v1090_v52 }
  0x92   :  { %vm508_vm8 = vweird.f32 %v2707_v21  ;;  %v516_v18 = vsel %vm514_vm6, %v515_v5, %v3235_v39  ;;  %v3297_v10 = vmul.f32 %v3276_v26, %v3276_v26  ;;  %v1349_v38 = vand.u32 2147483647, %v3141_v54 }
  0x93   :  { %v3300_v24 = vsub.s32 32, %v1363_v22  ;;  %v513_v59 = vsel %vm511_vm7, %v3219_v7, %v512_v56  ;;  %v671_v42 = vsel %vm669_vm0, %v515_v5, %v3235_v39  ;;  %v3306_v53 = vadd.s32 %v1079_v17, %v1070_v28 }
  0x94   :  { %v1102_v1 = vadd.s32 %v1101_v32, %v1092_v23  ;;  %v668_v37 = vsel %vm666_vm15, %v3219_v7, %v512_v56  ;;  %v818_v12 = vmul.f32 -0.001358992, %v3297_v10  ;;  %v1103_v60 = vmul.u32 %v3194_v61, %v1049_v46 }
  0x95   :  { %v1375_v49 = vshll.u32 %v2795_v33, %v1363_v22  ;;  %vm1105_vm1 = vc.u32 %v3306_v53, %v3290_v6  ;;  %v3316_v58 = vshrl.u32 %v1361_v14, 5  ;;  %v1366_v39 = vshll.u32 %v2792_v27, %v1363_v22 }
  0x96   :  { %v1369_v5 = vshll.u32 %v2793_v29, %v1363_v22  ;;  %v1106_v62 = vadd.s32 1, %v1102_v1  ;;  %v1367_v55 = vshrl.u32 %v2793_v29, %v3300_v24  ;;  %v1372_v7 = vshll.u32 %v2794_v31, %v1363_v22 }
  0x97   :  { %v1376_v61 = vshrl.u32 %v2796_v35, %v3300_v24  ;;  %v1370_v56 = vshrl.u32 %v2794_v31, %v3300_v24  ;;  %v1373_v3 = vshrl.u32 %v2795_v33, %v3300_v24  ;;  %v1378_v57 = vshll.u32 %v2796_v35, %v1363_v22 }
  0x98   :  { %v1379_v30 = vshrl.u32 %v2797_v44, %v3300_v24  ;;  %v360_v43 = vsel %vm195_vm5, nan, %v359_v45  ;;  %v825_v2 = vmul.f32 -0.00019511016, %v3297_v10  ;;  %v1107_v9 = vsel %vm1105_vm1, %v1106_v62, %v1102_v1 }
  0x99   :  { %v1377_v14 = vor.u32 %v1376_v61, %v1375_v49  ;;  %v813_v8 = vsub.s32 4, %v3127_v48  ;;  %v1108_v11 = vadd.s32 %v1107_v9, %v1103_v60  ;;  %v1356_v16 = vand.u32 8388607, %v1349_v38 }
  0x9a   :  { %vm1384_vm4 = vcmp.lt.s32.totalorder %v3316_v58, 4  ;;  %v517_v15 = vsel %vm510_vm13, %v513_v59, %v516_v18  ;;  %v672_v19 = vsel %vm665_vm14, %v668_v37, %v671_v42  ;;  %v819_v0 = vadd.f32 0.041655596, %v818_v12 }
  0x9b   :  { %v3343_v52 = vor.u32 %v1367_v55, %v1366_v39  ;;  %v1109_v34 = vadd.s32 536870912, %v1108_v11  ;;  %v3345_v23 = vor.u32 %v1370_v56, %v1369_v5  ;;  %v3347_v13 = vor.u32 %v1373_v3, %v1372_v7 }
  0x9c   :  { %v1380_v22 = vor.u32 %v1379_v30, %v1378_v57  ;;  %v826_v28 = vadd.f32 0.008332121, %v825_v2  ;;  %vm1381_vm5 = vcmp.lt.s32.totalorder %v3316_v58, 1  ;;  %vm1383_vm6 = vcmp.lt.s32.totalorder %v3316_v58, 3 }
  0x9d   :  { %v1390_v63 = vsel %vm1384_vm4, %v1377_v14, 920167782  ;;  %v361_v40 = vsub.f32 0.0, %v360_v43  ;;  %v673_v47 = vsel %vm508_vm8, nan, %v672_v19  ;;  %v814_v51 = vsel %vm691_vm2, %v813_v8, %v3127_v48 }
  0x9e   :  { %v3357_v45 = vshrl.u32 %v1109_v34, 30  ;;  %v518_v46 = vsel %vm508_vm8, nan, %v517_v15  ;;  %v820_v17 = vmul.f32 %v819_v0, %v3297_v10  ;;  %v1357_v32 = vor.u32 8388608, %v1356_v16 }
  0x9f   :  { %vm1382_vm7 = vcmp.lt.s32.totalorder %v3316_v58, 2  ;;  %v1389_v59 = vsel %vm1381_vm5, %v3343_v52, %v3345_v23  ;;  %v1391_v4 = vsel %vm1383_vm6, %v3347_v13, %v1390_v63  ;;  %v1394_v48 = vsel %vm1384_vm4, %v1380_v22, 1326507024 }
  0xa0   :  { %v1111_v18 = vshll.u32 %v3357_v45, 30  ;;  %v674_v21 = vsub.f32 0.0, %v673_v47  ;;  %v816_v42 = vsel %vm3239_vm3, 0, %v814_v51  ;;  %v827_v1 = vmul.f32 %v826_v28, %v3297_v10 }
  0xa1   :  { %v1393_v37 = vsel %vm1381_vm5, %v3345_v23, %v3347_v13  ;;  %v3380_v12 = vmul.f32 %v518_v46, %v3280_v20  ;;  %v676_v60 = vmul.f32 %v673_v47, %v361_v40  ;;  %v3382_v49 = vmul.f32 %v518_v46, %v361_v40 }
  0xa2   :  { %v1112_v39 = vsub.s32 %v1108_v11, %v1111_v18  ;;  %v3384_v5 = vmul.f32 %v518_v46, %v360_v43  ;;  %v821_v62 = vadd.f32 -0.4999988, %v820_v17  ;;  %v1392_v36 = vsel %vm1382_vm7, %v1389_v59, %v1391_v4 }
  0xa3   :  { %v1395_v55 = vsel %vm1383_vm6, %v1377_v14, %v1394_v48  ;;  %v3392_v56 = vshll.u32 %v1357_v32, 8  ;;  %v3395_v3 = vmul.f32 %v673_v47, %v3280_v20  ;;  %v828_v57 = vadd.f32 -0.16666654, %v827_v1  ;;  %v3421_v48 = vld [vmem:[#allocation2 + $0x28] sm:$0xff] }
  0xa4   :  { %vm1113_vm2 = vcmp.lt.s32.totalorder %v1112_v39, 0  ;;  %v1114_v7 = vsub.s32 0, %v1112_v39  ;;  %v1396_v61 = vsel %vm1382_vm7, %v1393_v37, %v1395_v55  ;;  %v3398_v9 = vadd.f32 %v676_v60, %v3380_v12 }
  0xa5   :  { %v1400_v30 = vand.u32 65535, %v1396_v61  ;;  %v1401_v2 = vshrl.u32 %v1396_v61, 16  ;;  %v1398_v11 = vand.u32 65535, %v3392_v56  ;;  %v1399_v14 = vshrl.u32 %v3392_v56, 16 }
  0xa6   :  { %v1115_v8 = vsel %vm1113_vm2, %v1114_v7, %v1112_v39  ;;  %v3403_v16 = vmul.f32 %v674_v21, %v3280_v20  ;;  %v822_v15 = vmul.f32 %v821_v62, %v3297_v10  ;;  %v1423_v0 = vshrl.u32 %v1392_v36, 16 }
  0xa7   :  { %v1116_v19 = vclz %v1115_v8  ;;  %v3406_v34 = vmul.f32 %v674_v21, %v360_v43  ;;  %v1402_v22 = vmul.u32 %v1400_v30, %v1398_v11  ;;  %v1403_v28 = vmul.u32 %v1401_v2, %v1398_v11 }
  0xa8   :  { %v3408_v63 = vmul.u32 %v1400_v30, %v1399_v14  ;;  %v829_v40 = vmul.f32 %v828_v57, %v3297_v10  ;;  %v3411_v47 = vand.u32 3, %v816_v42  ;;  %v3413_v51 = vadd.s32 3, %v816_v42 }
  0xa9   :  { %v2660_v46 = vadd.s32 4294967294, %v1116_v19  ;;  %v1104_v20 = vadd.s32 %v3290_v6, %v3306_v53  ;;  %v1365_v17 = vshrl.u32 %v2792_v27, %v3300_v24  ;;  %v1406_v32 = vshll.u32 %v1403_v28, 16 }
  0xaa   :  { %v1422_v43 = vand.u32 65535, %v1392_v36  ;;  %v3419_v18 = vadd.f32 1.0, %v822_v15  ;;  %v1405_v59 = vmul.u32 %v1401_v2, %v1399_v14  ;;  %v1425_v4 = vmul.u32 %v1423_v0, %v1398_v11 }
  0xab   :  { %vm2661_vm3 = vcmp.lt.s32.totalorder %v2660_v46, 0  ;;  %v1408_v21 = vshll.u32 %v3408_v63, 16  ;;  %vm1410_vm9 = vc.u32 %v1402_v22, %v1406_v32  ;;  %v1412_v42 = vadd.s32 %v1406_v32, %v1402_v22 }
  0xac   :  { %v1119_v10 = vsel %vm2661_vm3, 0, %v2660_v46  ;;  %v830_v1 = vadd.f32 1.0, %v829_v40  ;;  %vm1012_vm10 = vcmp.lt.s32.totalorder %v3071_v41, 0  ;;  %v1385_v37 = vsel %vm1381_vm5, %v1365_v17, %v3343_v52 }
  0xad   :  { %v1120_v6 = vsub.s32 32, %v1119_v10  ;;  %v1121_v53 = vshll.u32 %v1112_v39, %v1119_v10  ;;  %v1124_v24 = vsub.s32 4294967266, %v1119_v10  ;;  %v1424_v60 = vmul.u32 %v1422_v43, %v1398_v11 }
  0xae   :  { %v1426_v62 = vmul.u32 %v1422_v43, %v1399_v14  ;;  %v1706_v36 = vand.u32 2139095040, %v3421_v48  ;;  %v1407_v61 = vshrl.u32 %v1403_v28, 16  ;;  %v1411_v57 = vsel %vm1410_vm9, 1, %v2798_v50 }
  0xaf   :  { %v1122_v55 = vshrl.u32 %v1104_v20, %v1120_v6  ;;  %v1125_v7 = vadd.s32 127, %v1124_v24  ;;  %vm3432_vm11 = vcmp.le.f32.partialorder %v1010_v25, 0.7853982  ;;  %v1413_v39 = vadd.s32 %v1411_v57, %v1405_v59 }
  0xb0   :  { %vm1414_vm12 = vc.u32 %v1412_v42, %v1408_v21  ;;  %v1427_v2 = vmul.u32 %v1423_v0, %v1399_v14  ;;  %v1428_v8 = vshll.u32 %v1425_v4, 16  ;;  %v1386_v15 = vsel %vm1384_vm4, %v3347_v13, 2102212464 }
  0xb1   :  { %v1123_v52 = vor.u32 %v1122_v55, %v1121_v53  ;;  %v1126_v11 = vshll.u32 %v1125_v7, 23  ;;  %v1415_v19 = vsel %vm1414_vm12, 1, %v2798_v50  ;;  %v1134_v22 = vsub.s32 4, %v3357_v45 }
  0xb2   :  { %v1417_v28 = vadd.s32 %v1415_v19, %v1413_v39  ;;  %v1430_v40 = vshll.u32 %v1426_v62, 16  ;;  %vm1432_vm13 = vc.u32 %v1424_v60, %v1428_v8  ;;  %v1434_v17 = vadd.s32 %v1428_v8, %v1424_v60 }
  0xb3   :  { %v1127_v25 = vor.u32 4788187, %v1126_v11  ;;  %v1130_v46 = vcvt.s32.f32 %v1123_v52  ;;  %v1433_v20 = vsel %vm1432_vm13, 1, %v2798_v50  ;;  %v1409_v14 = vshrl.u32 %v3408_v63, 16 }
  0xb4   :  { %v1418_v0 = vadd.s32 %v1417_v28, %v1407_v61  ;;  %v1435_v32 = vadd.s32 %v1433_v20, %v1427_v2  ;;  %v1707_v43 = vshrl.u32 %v1706_v36, 23  ;;  %v1387_v13 = vsel %vm1383_vm6, %v3345_v23, %v1386_v15 }
  0xb5   :  { %v1128_v59 = vand.u32 2147483647, %v1127_v25  ;;  %v1429_v10 = vshrl.u32 %v1425_v4, 16  ;;  %vm1436_vm14 = vc.u32 %v1434_v17, %v1430_v40  ;;  %v831_v21 = vmul.f32 %v830_v1, %v3276_v26 }
  0xb6   :  { %v1135_v42 = vsel %vm1012_vm10, %v1134_v22, %v3357_v45  ;;  %v1437_v6 = vsel %vm1436_vm14, 1, %v2798_v50  ;;  %v2671_v53 = vadd.s32 4294967169, %v1707_v43  ;;  %vm835_vm15 = vcmp.eq.s32.totalorder %v3411_v47, 0 }
  0xb7   :  { %v1131_v63 = vmul.f32 %v1130_v46, %v1128_v59  ;;  %v1431_v24 = vshrl.u32 %v1426_v62, 16  ;;  %v1439_v60 = vadd.s32 %v1437_v6, %v1435_v32  ;;  %v1388_v36 = vsel %vm1382_vm7, %v1385_v37, %v1387_v13  ;;  %v3506_v13 = vld [vmem:[#allocation2 + $0x10] sm:$0xff] }
  0xb8   :  { %v3454_v23 = vadd.s32 %v1418_v0, %v1409_v14  ;;  %v3456_v4 = vadd.s32 %v1434_v17, %v1430_v40  ;;  %v1713_v26 = vadd.s32 1, %v2671_v53  ;;  %v3459_v1 = vand.u32 3, %v3413_v51 }
  0xb9   :  { %v1132_v45 = vxor.u32 2147483648, %v1131_v63  ;;  %v1137_v55 = vsel %vm3432_vm11, 0, %v1135_v42  ;;  %v1440_v7 = vadd.s32 %v1439_v60, %v1429_v10  ;;  %v836_v61 = vxor.u32 2147483648, %v831_v21 }
  0xba   :  { %vm838_vm0 = vcmp.eq.s32.totalorder %v3411_v47, 2  ;;  %v839_v62 = vxor.u32 2147483648, %v3419_v18  ;;  %vm1714_vm8 = vcmp.gt.s32.totalorder %v1713_v26, 0  ;;  %v1442_v57 = vmul.u32 %v3392_v56, %v1388_v36 }
  0xbb   :  { %v1133_v58 = vsel %vm1012_vm10, %v1132_v45, %v1131_v63  ;;  %v1441_v37 = vadd.s32 %v1440_v7, %v1431_v24  ;;  %v1715_v39 = vsel %vm1714_vm8, %v1713_v26, 0  ;;  %v1308_v2 = vadd.s32 3, %v1137_v55 }
  0xbc   :  { %v3471_v51 = vsel %vm3432_vm11, %v3071_v41, %v1133_v58  ;;  %vm1444_vm1 = vc.u32 %v3454_v23, %v3456_v4  ;;  %v1717_v8 = vand.u32 31, %v1715_v39  ;;  %vm834_vm4 = vcmp.lt.s32.totalorder %v3411_v47, 2 }
  0xbd   :  { %vm990_vm5 = vcmp.eq.s32.totalorder %v3459_v1, 0  ;;  %v1138_v52 = vmul.f32 %v3471_v51, %v3471_v51  ;;  %v1445_v11 = vadd.s32 1, %v1441_v37  ;;  %v837_v56 = vsel %vm835_vm15, %v3419_v18, %v836_v61 }
  0xbe   :  { %v840_v30 = vsel %vm838_vm0, %v839_v62, %v831_v21  ;;  %vm993_vm6 = vcmp.eq.s32.totalorder %v3459_v1, 2  ;;  %v3485_v15 = vand.u32 3, %v1137_v55  ;;  %v1703_v40 = vand.u32 2147483647, %v3421_v48 }
  0xbf   :  { %v1139_v19 = vmul.f32 -0.001358992, %v1138_v52  ;;  %v1146_v22 = vmul.f32 -0.00019511016, %v1138_v52  ;;  %v1446_v28 = vsel %vm1444_vm1, %v1445_v11, %v1441_v37  ;;  %v3490_v25 = vadd.f32 %v3395_v3, %v3384_v5 }
  0xc0   :  { %v3492_v46 = vand.u32 3, %v1308_v2  ;;  %v1447_v20 = vadd.s32 %v1446_v28, %v1442_v57  ;;  %v3494_v17 = vsub.s32 32, %v1717_v8  ;;  %v3498_v14 = vadd.f32 %v3382_v49, %v3403_v16 }
  0xc1   :  { %v995_v0 = vsel %vm993_vm6, %v839_v62, %v831_v21  ;;  %v1140_v32 = vadd.f32 0.041655596, %v1139_v19  ;;  %v1147_v43 = vadd.f32 0.008332121, %v1146_v22  ;;  %v841_v59 = vsel %vm834_vm4, %v837_v56, %v840_v30 }
  0xc2   :  { %v992_v5 = vsel %vm990_vm5, %v3419_v18, %v836_v61  ;;  %vm1159_vm7 = vcmp.eq.s32.totalorder %v3485_v15, 2  ;;  %v1448_v3 = vadd.s32 536870912, %v1447_v20  ;;  %vm832_vm2 = vweird.f32 %v3506_v13 }
  0xc3   :  { %vm989_vm3 = vcmp.lt.s32.totalorder %v3459_v1, 2  ;;  %v1141_v49 = vmul.f32 %v1140_v32, %v1138_v52  ;;  %v1148_v16 = vmul.f32 %v1147_v43, %v1138_v52  ;;  %v1710_v10 = vand.u32 8388607, %v1703_v40 }
  0xc4   :  { %v3512_v47 = vshrl.u32 %v1715_v39, 5  ;;  %vm1156_vm9 = vcmp.eq.s32.totalorder %v3485_v15, 0  ;;  %vm1311_vm10 = vcmp.eq.s32.totalorder %v3492_v46, 0  ;;  %v3516_v18 = vshrl.u32 %v1448_v3, 30 }
  0xc5   :  { %v1720_v21 = vshll.u32 %v2792_v27, %v1717_v8  ;;  %v1729_v42 = vshll.u32 %v2795_v33, %v1717_v8  ;;  %v1730_v6 = vshrl.u32 %v2796_v35, %v3494_v17  ;;  %v1142_v53 = vadd.f32 -0.4999988, %v1141_v49 }
  0xc6   :  { %v1149_v63 = vadd.f32 -0.16666654, %v1148_v16  ;;  %vm1155_vm11 = vcmp.lt.s32.totalorder %v3485_v15, 2  ;;  %v1723_v24 = vshll.u32 %v2793_v29, %v1717_v8  ;;  %v1726_v60 = vshll.u32 %v2794_v31, %v1717_v8 }
  0xc7   :  { %v1450_v36 = vshll.u32 %v3516_v18, 30  ;;  %v1721_v26 = vshrl.u32 %v2793_v29, %v3494_v17  ;;  %v1724_v45 = vshrl.u32 %v2794_v31, %v3494_v17  ;;  %v1727_v55 = vshrl.u32 %v2795_v33, %v3494_v17 }
  0xc8   :  { %v1143_v7 = vmul.f32 %v1142_v53, %v1138_v52  ;;  %v1150_v61 = vmul.f32 %v1149_v63, %v1138_v52  ;;  %v1732_v62 = vshll.u32 %v2796_v35, %v1717_v8  ;;  %v1733_v58 = vshrl.u32 %v2797_v44, %v3494_v17 }
  0xc9   :  { %vm1310_vm12 = vcmp.lt.s32.totalorder %v3492_v46, 2  ;;  %vm1314_vm13 = vcmp.eq.s32.totalorder %v3492_v46, 2  ;;  %v3537_v37 = vsub.s32 %v1447_v20, %v1450_v36  ;;  %v1731_v57 = vor.u32 %v1730_v6, %v1729_v42 }
  0xca   :  { %v1144_v39 = vadd.f32 1.0, %v1143_v7  ;;  %v1151_v2 = vadd.f32 1.0, %v1150_v61  ;;  %v1711_v11 = vor.u32 8388608, %v1710_v10  ;;  %vm1738_vm14 = vcmp.lt.s32.totalorder %v3512_v47, 4 }
  0xcb   :  { %vm1452_vm15 = vcmp.lt.s32.totalorder %v3537_v37, 0  ;;  %v1453_v52 = vsub.s32 0, %v3537_v37  ;;  %v3542_v8 = vor.u32 %v1721_v26, %v1720_v21  ;;  %v3544_v56 = vor.u32 %v1724_v45, %v1723_v24 }
  0xcc   :  { %v1152_v30 = vmul.f32 %v1151_v2, %v3471_v51  ;;  %v1160_v19 = vxor.u32 2147483648, %v1144_v39  ;;  %v3547_v22 = vor.u32 %v1727_v55, %v1726_v60  ;;  %v1734_v28 = vor.u32 %v1733_v58, %v1732_v62 }
  0xcd   :  { %v1454_v20 = vsel %vm1452_vm15, %v1453_v52, %v3537_v37  ;;  %vm1735_vm0 = vcmp.lt.s32.totalorder %v3512_v47, 1  ;;  %vm1737_vm8 = vcmp.lt.s32.totalorder %v3512_v47, 3  ;;  %v1744_v32 = vsel %vm1738_vm14, %v1731_v57, 920167782 }
  0xce   :  { %v1157_v43 = vxor.u32 2147483648, %v1152_v30  ;;  %v1161_v3 = vsel %vm1159_vm7, %v1160_v19, %v1152_v30  ;;  %v1316_v51 = vsel %vm1314_vm13, %v1160_v19, %v1152_v30  ;;  %v1455_v49 = vclz %v1454_v20  ;;  %v3630_v19 = vld [vmem:[#allocation2 + $0x30] sm:$0xff] }
  0xcf   :  { %v3560_v16 = vsel %vm832_vm2, nan, %v841_v59  ;;  %v996_v10 = vsel %vm989_vm3, %v992_v5, %v995_v0  ;;  %vm1153_vm1 = vweird.f32 %v3071_v41  ;;  %vm1736_vm4 = vcmp.lt.s32.totalorder %v3512_v47, 2 }
  0xd0   :  { %v1158_v21 = vsel %vm1156_vm9, %v1144_v39, %v1157_v43  ;;  %v1313_v42 = vsel %vm1311_vm10, %v1144_v39, %v1157_v43  ;;  %v1743_v6 = vsel %vm1735_vm0, %v3542_v8, %v3544_v56  ;;  %v1748_v59 = vsel %vm1738_vm14, %v1734_v28, 1326507024 }
  0xd1   :  { %v1162_v1 = vsel %vm1155_vm11, %v1158_v21, %v1161_v3  ;;  %v1317_v41 = vsel %vm1310_vm12, %v1313_v42, %v1316_v51  ;;  %v2666_v0 = vadd.s32 4294967294, %v1455_v49  ;;  %v1745_v5 = vsel %vm1737_vm8, %v3547_v22, %v1744_v32 }
  0xd2   :  { %v3585_v53 = vmul.f32 %v3560_v16, %v3398_v9  ;;  %v3587_v63 = vsel %vm1153_vm1, nan, %v1162_v1  ;;  %v3589_v24 = vsel %vm1153_vm1, nan, %v1317_v41  ;;  %v3591_v60 = vshll.u32 %v1711_v11, 8 }
  0xd3   :  { %v1319_v15 = vmul.f32 0.0825, %v3587_v63  ;;  %v1321_v46 = vmul.f32 0.0825, %v3589_v24  ;;  %v1747_v36 = vsel %vm1735_vm0, %v3544_v56, %v3547_v22  ;;  %v1749_v26 = vsel %vm1737_vm8, %v1731_v57, %v1748_v59 }
  0xd4   :  { %v3603_v45 = vadd.f32 %v3406_v34, %v3380_v12  ;;  %v3607_v55 = vsel %vm832_vm2, nan, %v996_v10  ;;  %v3611_v7 = vmul.f32 %v3560_v16, %v3490_v25  ;;  %v1746_v61 = vsel %vm1736_vm4, %v1743_v6, %v1745_v5 }
  0xd5   :  { %v3616_v62 = vsub.f32 0.0, %v3607_v55  ;;  %v1328_v58 = vmul.f32 %v1319_v15, %v3585_v53  ;;  %v1329_v57 = vmul.f32 %v1321_v46, %v3498_v14  ;;  %vm2667_vm5 = vcmp.lt.s32.totalorder %v2666_v0, 0 }
  0xd6   :  { %v1338_v12 = vmul.f32 %v1319_v15, %v3611_v7  ;;  %v1443_v34 = vadd.s32 %v3456_v4, %v3454_v23  ;;  %v1750_v13 = vsel %vm1736_vm4, %v1747_v36, %v1749_v26  ;;  %v1752_v39 = vand.u32 65535, %v3591_v60 }
  0xd7   :  { %v3626_v2 = vadd.f32 %v1329_v57, %v1328_v58  ;;  %v1339_v11 = vmul.f32 %v1321_v46, %v3603_v45  ;;  %v1753_v52 = vshrl.u32 %v3591_v60, 16  ;;  %v1777_v30 = vshrl.u32 %v1746_v61, 16 }
  0xd8   :  { %v3633_v28 = vmul.f32 %v1319_v15, %v3616_v62  ;;  %v1458_v20 = vsel %vm2667_vm5, 0, %v2666_v0  ;;  %v1754_v32 = vand.u32 65535, %v1750_v13  ;;  %v1776_v23 = vand.u32 65535, %v1746_v61 }
  0xd9   :  { %v3635_v4 = vadd.f32 %v1339_v11, %v1338_v12  ;;  %v1459_v43 = vsub.s32 32, %v1458_v20  ;;  %v1460_v3 = vshll.u32 %v3537_v37, %v1458_v20  ;;  %v1755_v51 = vshrl.u32 %v1750_v13, 16 }
  0xda   :  { %v1463_v49 = vsub.s32 4294967266, %v1458_v20  ;;  %v2037_v10 = vand.u32 2139095040, %v3630_v19  ;;  %v1779_v42 = vmul.u32 %v1777_v30, %v1752_v39  ;;  %v3640_v6 = vmul.f32 0.316, %v3498_v14 }
  0xdb   :  { %v1461_v21 = vshrl.u32 %v1443_v34, %v1459_v43  ;;  %v1719_v1 = vshrl.u32 %v2792_v27, %v3494_v17  ;;  %vm1351_vm6 = vcmp.lt.s32.totalorder %v3141_v54, 0  ;;  %v1757_v0 = vmul.u32 %v1755_v51, %v1752_v39 }
  0xdc   :  { %v1464_v59 = vadd.s32 127, %v1463_v49  ;;  %v1758_v5 = vmul.u32 %v1754_v32, %v1753_v52  ;;  %v1780_v15 = vmul.u32 %v1776_v23, %v1753_v52  ;;  %vm3647_vm7 = vcmp.le.f32.partialorder %v1349_v38, 0.7853982 }
  0xdd   :  { %v1462_v41 = vor.u32 %v1461_v21, %v1460_v3  ;;  %v1756_v36 = vmul.u32 %v1754_v32, %v1752_v39  ;;  %v2038_v26 = vshrl.u32 %v2037_v10, 23  ;;  %v1740_v61 = vsel %vm1738_vm14, %v3547_v22, 2102212464 }
  0xde   :  { %v1465_v46 = vshll.u32 %v1464_v59, 23  ;;  %v1759_v17 = vmul.u32 %v1755_v51, %v1753_v52  ;;  %v1778_v58 = vmul.u32 %v1776_v23, %v1752_v39  ;;  %v1782_v57 = vshll.u32 %v1779_v42, 16 }
  0xdf   :  { %v1469_v34 = vcvt.s32.f32 %v1462_v41  ;;  %v1760_v13 = vshll.u32 %v1757_v0, 16  ;;  %v1762_v11 = vshll.u32 %v1758_v5, 16  ;;  %v1473_v20 = vsub.s32 4, %v3516_v18 }
  0xe0   :  { %v1466_v12 = vor.u32 4788187, %v1465_v46  ;;  %v1739_v38 = vsel %vm1735_vm0, %v1719_v1, %v3542_v8  ;;  %v1781_v43 = vmul.u32 %v1777_v30, %v1753_v52  ;;  %v1784_v32 = vshll.u32 %v1780_v15, 16 }
  0xe1   :  { %v1741_v22 = vsel %vm1737_vm8, %v3544_v56, %v1740_v61  ;;  %vm1764_vm2 = vc.u32 %v1756_v36, %v1760_v13  ;;  %v1766_v39 = vadd.s32 %v1760_v13, %v1756_v36  ;;  %v1761_v23 = vshrl.u32 %v1757_v0, 16 }
  0xe2   :  { %v1467_v3 = vand.u32 2147483647, %v1466_v12  ;;  %v1765_v51 = vsel %vm1764_vm2, 1, %v2798_v50  ;;  %vm1786_vm3 = vc.u32 %v1778_v58, %v1782_v57  ;;  %v1788_v49 = vadd.s32 %v1782_v57, %v1778_v58 }
  0xe3   :  { %v1767_v21 = vadd.s32 %v1765_v51, %v1759_v17  ;;  %vm1768_vm9 = vc.u32 %v1766_v39, %v1762_v11  ;;  %v1787_v59 = vsel %vm1786_vm3, 1, %v2798_v50  ;;  %v1783_v52 = vshrl.u32 %v1779_v42, 16 }
  0xe4   :  { %v1470_v10 = vmul.f32 %v1469_v34, %v1467_v3  ;;  %v1769_v8 = vsel %vm1768_vm9, 1, %v2798_v50  ;;  %v1789_v30 = vadd.s32 %v1787_v59, %v1781_v43  ;;  %vm1790_vm10 = vc.u32 %v1788_v49, %v1784_v32 }
  0xe5   :  { %v1763_v41 = vshrl.u32 %v1758_v5, 16  ;;  %v1771_v56 = vadd.s32 %v1769_v8, %v1767_v21  ;;  %v1791_v46 = vsel %vm1790_vm10, 1, %v2798_v50  ;;  %v1742_v0 = vsel %vm1736_vm4, %v1739_v38, %v1741_v22 }
  0xe6   :  { %v1471_v1 = vxor.u32 2147483648, %v1470_v10  ;;  %v1785_v36 = vshrl.u32 %v1780_v15, 16  ;;  %v1793_v61 = vadd.s32 %v1791_v46, %v1789_v30  ;;  %v2677_v58 = vadd.s32 4294967169, %v2038_v26 }
  0xe7   :  { %v1474_v42 = vsel %vm1351_vm6, %v1473_v20, %v3516_v18  ;;  %v1772_v57 = vadd.s32 %v1771_v56, %v1761_v23  ;;  %v3672_v12 = vadd.s32 %v1788_v49, %v1784_v32  ;;  %v998_v5 = vsub.f32 0.0, %v3560_v16 }
  0xe8   :  { %v1472_v17 = vsel %vm1351_vm6, %v1471_v1, %v1470_v10  ;;  %v1004_v34 = vmul.f32 0.316, %v3603_v45  ;;  %v1794_v15 = vadd.s32 %v1793_v61, %v1783_v52  ;;  %v3681_v26 = vmul.f32 %v3607_v55, %v3398_v9 }
  0xe9   :  { %v1475_v47 = vsel %vm3647_vm7, %v3141_v54, %v1472_v17  ;;  %v3685_v13 = vmul.f32 %v3607_v55, %v3490_v25  ;;  %v3687_v11 = vadd.s32 %v1772_v57, %v1763_v41  ;;  %v1320_v16 = vsub.f32 0.0, %v3587_v63 }
  0xea   :  { %v1477_v18 = vmul.f32 %v1475_v47, %v1475_v47  ;;  %v1476_v20 = vsel %vm3647_vm7, 0, %v1474_v42  ;;  %v1795_v38 = vadd.s32 %v1794_v15, %v1785_v36  ;;  %v1796_v54 = vmul.u32 %v3591_v60, %v1742_v0 }
  0xeb   :  { %vm1798_vm11 = vc.u32 %v3687_v11, %v3672_v12  ;;  %v2044_v9 = vadd.s32 1, %v2677_v58  ;;  %v3695_v3 = vsub.f32 0.0, %v998_v5  ;;  %v1322_v25 = vmul.f32 %v3587_v63, %v3585_v53 }
  0xec   :  { %v1478_v43 = vmul.f32 -0.001358992, %v1477_v18  ;;  %v1485_v32 = vmul.f32 -0.00019511016, %v1477_v18  ;;  %v1323_v55 = vmul.f32 %v3589_v24, %v3498_v14  ;;  %v1799_v22 = vadd.s32 1, %v1795_v38 }
  0xed   :  { %v1332_v37 = vmul.f32 %v3587_v63, %v3611_v7  ;;  %v1333_v60 = vmul.f32 %v3589_v24, %v3603_v45  ;;  %v1325_v51 = vmul.f32 %v3589_v24, %v3585_v53  ;;  %v1326_v49 = vmul.f32 %v1320_v16, %v3498_v14 }
  0xee   :  { %v1479_v39 = vadd.f32 0.041655596, %v1478_v43  ;;  %v1486_v23 = vadd.f32 0.008332121, %v1485_v32  ;;  %v1647_v10 = vadd.s32 3, %v1476_v20  ;;  %v1800_v21 = vsel %vm1798_vm11, %v1799_v22, %v1795_v38  ;;  %v2709_v32 = vld [vmem:[#allocation2 + $0x20] sm:$0xff] }
  0xef   :  { %v1801_v52 = vadd.s32 %v1800_v21, %v1796_v54  ;;  %vm2045_vm12 = vcmp.gt.s32.totalorder %v2044_v9, 0  ;;  %v3708_v30 = vadd.f32 %v1323_v55, %v1322_v25  ;;  %v1335_v1 = vmul.f32 %v3589_v24, %v3611_v7 }
  0xf0   :  { %v1480_v59 = vmul.f32 %v1479_v39, %v1477_v18  ;;  %v1487_v8 = vmul.f32 %v1486_v23, %v1477_v18  ;;  %v1336_v41 = vmul.f32 %v1320_v16, %v3603_v45  ;;  %v2034_v56 = vand.u32 2147483647, %v3630_v19 }
  0xf1   :  { %v3714_v46 = vadd.f32 %v1333_v60, %v1332_v37  ;;  %v1802_v14 = vadd.s32 536870912, %v1801_v52  ;;  %v3716_v36 = vadd.f32 %v1326_v49, %v1325_v51  ;;  %v1493_v61 = vand.u32 3, %v1476_v20 }
  0xf2   :  { %v1481_v53 = vadd.f32 -0.4999988, %v1480_v59  ;;  %v1488_v0 = vadd.f32 -0.16666654, %v1487_v8  ;;  %v1648_v58 = vand.u32 3, %v1647_v10  ;;  %v2046_v17 = vsel %vm2045_vm12, %v2044_v9, 0 }
  0xf3   :  { %v3720_v42 = vmul.f32 %v3587_v63, %v3616_v62  ;;  %v3722_v5 = vshrl.u32 %v1802_v14, 30  ;;  %v3726_v45 = vadd.f32 %v3626_v2, %v3640_v6  ;;  %v3728_v15 = vadd.f32 %v1336_v41, %v1335_v1 }
  0xf4   :  { %v1482_v57 = vmul.f32 %v1481_v53, %v1477_v18  ;;  %v1489_v7 = vmul.f32 %v1488_v0, %v1477_v18  ;;  %v3732_v16 = vmul.f32 %v3589_v24, %v3616_v62  ;;  %v3735_v20 = vadd.f32 0.333, %v3633_v28 }
  0xf5   :  { %v1804_v54 = vshll.u32 %v3722_v5, 30  ;;  %v2048_v18 = vand.u32 31, %v2046_v17  ;;  %v3739_v43 = vadd.f32 %v3635_v4, %v1004_v34  ;;  %vm1492_vm13 = vweird.f32 %v2709_v32 }
  0xf6   :  { %v1483_v38 = vadd.f32 1.0, %v1482_v57  ;;  %v1490_v63 = vadd.f32 1.0, %v1489_v7  ;;  %vm1498_vm14 = vcmp.eq.s32.totalorder %v1493_v61, 2  ;;  %vm1653_vm15 = vcmp.eq.s32.totalorder %v1648_v58, 2 }
  0xf7   :  { %vm1494_vm0 = vcmp.lt.s32.totalorder %v1493_v61, 2  ;;  %v3741_v24 = vsub.s32 %v1801_v52, %v1804_v54  ;;  %vm1495_vm8 = vcmp.eq.s32.totalorder %v1493_v61, 0  ;;  %vm1649_vm1 = vcmp.lt.s32.totalorder %v1648_v58, 2 }
  0xf8   :  { %v1491_v2 = vmul.f32 %v1490_v63, %v1475_v47  ;;  %v1499_v6 = vxor.u32 2147483648, %v1483_v38  ;;  %vm1650_vm4 = vcmp.eq.s32.totalorder %v1648_v58, 0  ;;  %v1671_v62 = vmul.f32 0.384, %v3716_v36 }
  0xf9   :  { %v3744_v55 = vsub.s32 32, %v2048_v18  ;;  %v1684_v4 = vmul.f32 0.384, %v3728_v15  ;;  %v1807_v34 = vsub.s32 0, %v3741_v24  ;;  %v2041_v47 = vand.u32 8388607, %v2034_v56 }
  0xfa   :  { %v1496_v28 = vxor.u32 2147483648, %v1491_v2  ;;  %v1500_v9 = vsel %vm1498_vm14, %v1499_v6, %v1491_v2  ;;  %v1655_v25 = vsel %vm1653_vm15, %v1499_v6, %v1491_v2  ;;  %v3750_v22 = vshrl.u32 %v2046_v17, 5 }
  0xfb   :  { %vm1806_vm5 = vcmp.lt.s32.totalorder %v3741_v24, 0  ;;  %v2051_v39 = vshll.u32 %v2792_v27, %v2048_v18  ;;  %v2054_v49 = vshll.u32 %v2793_v29, %v2048_v18  ;;  %v2060_v10 = vshll.u32 %v2795_v33, %v2048_v18 }
  0xfc   :  { %v1497_v37 = vsel %vm1495_vm8, %v1483_v38, %v1496_v28  ;;  %v1652_v60 = vsel %vm1650_vm4, %v1483_v38, %v1496_v28  ;;  %v2061_v8 = vshrl.u32 %v2796_v35, %v3744_v55  ;;  %v2063_v52 = vshll.u32 %v2796_v35, %v2048_v18 }
  0xfd   :  { %v1501_v23 = vsel %vm1494_vm0, %v1497_v37, %v1500_v9  ;;  %v1656_v51 = vsel %vm1649_vm1, %v1652_v60, %v1655_v25  ;;  %v1808_v53 = vsel %vm1806_vm5, %v1807_v34, %v3741_v24  ;;  %v2064_v0 = vshrl.u32 %v2797_v44, %v3744_v55 }
  0xfe   :  { %v3759_v21 = vsel %vm1492_vm13, nan, %v1501_v23  ;;  %v3762_v59 = vsel %vm1492_vm13, nan, %v1656_v51  ;;  %v2052_v14 = vshrl.u32 %v2793_v29, %v3744_v55  ;;  %v2055_v61 = vshrl.u32 %v2794_v31, %v3744_v55 }
  0xff   :  { %v1659_v1 = vmul.f32 -0.0825, %v3759_v21  ;;  %v1660_v41 = vmul.f32 -0.0825, %v3762_v59  ;;  %v2057_v58 = vshll.u32 %v2794_v31, %v2048_v18  ;;  %v2058_v35 = vshrl.u32 %v2795_v33, %v3744_v55 }
 0x100   :  { %v1697_v7 = vmul.f32 0.384, %v3732_v16  ;;  %v2042_v38 = vor.u32 8388608, %v2041_v47  ;;  %v1797_v29 = vadd.s32 %v3672_v12, %v3687_v11  ;;  %v1809_v63 = vclz %v1808_v53 }
 0x101   :  { %v1668_v17 = vmul.f32 %v1659_v1, %v3708_v30  ;;  %v1669_v57 = vmul.f32 %v1660_v41, %v3681_v26  ;;  %v1681_v44 = vmul.f32 %v1659_v1, %v3714_v46  ;;  %v2062_v54 = vor.u32 %v2061_v8, %v2060_v10 }
 0x102   :  { %v1682_v31 = vmul.f32 %v1660_v41, %v3685_v13  ;;  %v2065_v18 = vor.u32 %v2064_v0, %v2063_v52  ;;  %vm2069_vm6 = vcmp.lt.s32.totalorder %v3750_v22, 4  ;;  %v2053_v33 = vor.u32 %v2052_v14, %v2051_v39 }
 0x103   :  { %v1670_v32 = vadd.f32 %v1669_v57, %v1668_v17  ;;  %v3787_v2 = vor.u32 %v2055_v61, %v2054_v49  ;;  %v2059_v6 = vor.u32 %v2058_v35, %v2057_v58  ;;  %vm2066_vm7 = vcmp.lt.s32.totalorder %v3750_v22, 1 }
 0x104   :  { %v1683_v9 = vadd.f32 %v1682_v31, %v1681_v44  ;;  %v1694_v25 = vmul.f32 %v1659_v1, %v3720_v42  ;;  %v1695_v12 = vmul.f32 %v1660_v41, %v3695_v3  ;;  %v2672_v11 = vadd.s32 4294967294, %v1809_v63 }
 0x105   :  { %v1672_v28 = vadd.f32 %v1671_v62, %v1670_v32  ;;  %vm2068_vm2 = vcmp.lt.s32.totalorder %v3750_v22, 3  ;;  %v2075_v34 = vsel %vm2069_vm6, %v2062_v54, 920167782  ;;  %v3795_v47 = vshll.u32 %v2042_v38, 8 }
 0x106   :  { %v1685_v60 = vadd.f32 %v1684_v4, %v1683_v9  ;;  %v1696_v39 = vadd.f32 %v1695_v12, %v1694_v25  ;;  %v2079_v62 = vsel %vm2069_vm6, %v2065_v18, 1326507024  ;;  %vm2673_vm3 = vcmp.lt.s32.totalorder %v2672_v11, 0 }
 0x107   :  { %v3798_v37 = vadd.f32 %v1672_v28, %v3726_v45  ;;  %vm2067_vm9 = vcmp.lt.s32.totalorder %v3750_v22, 2  ;;  %v2074_v23 = vsel %vm2066_vm7, %v2053_v33, %v3787_v2  ;;  %v2078_v51 = vsel %vm2066_vm7, %v3787_v2, %v2059_v6 }
 0x108   :  { %v3810_v49 = vadd.f32 %v1685_v60, %v3739_v43  ;;  %v1698_v45 = vadd.f32 %v1697_v7, %v1696_v39  ;;  %v1812_v4 = vsel %vm2673_vm3, 0, %v2672_v11  ;;  %v2076_v10 = vsel %vm2068_vm2, %v2059_v6, %v2075_v34 }
 0x109   :  { %v1813_v8 = vsub.s32 32, %v1812_v4  ;;  %v1814_v52 = vshll.u32 %v3741_v24, %v1812_v4  ;;  %v1817_v1 = vsub.s32 4294967266, %v1812_v4  ;;  %v2080_v41 = vsel %vm2068_vm2, %v2062_v54, %v2079_v62 }
 0x10a   :  { %v3818_v53 = vadd.f32 %v1698_v45, %v3735_v20  ;;  %v2050_v0 = vshrl.u32 %v2792_v27, %v3744_v55  ;;  %v2077_v61 = vsel %vm2067_vm9, %v2074_v23, %v2076_v10  ;;  %vm1705_vm10 = vcmp.lt.s32.totalorder %v3421_v48, 0 }
 0x10b   :  { %v1815_v43 = vshrl.u32 %v1797_v29, %v1813_v8  ;;  %v1818_v14 = vadd.s32 127, %v1817_v1  ;;  %v2081_v24 = vsel %vm2067_vm9, %v2078_v51, %v2080_v41  ;;  %v2083_v58 = vand.u32 65535, %v3795_v47 }
 0x10c   :  { %v2084_v35 = vshrl.u32 %v3795_v47, 16  ;;  %v2107_v17 = vand.u32 65535, %v2077_v61  ;;  %v2085_v7 = vand.u32 65535, %v2081_v24  ;;  %v2086_v38 = vshrl.u32 %v2081_v24, 16 }
 0x10d   :  { %v1816_v20 = vor.u32 %v1815_v43, %v1814_v52  ;;  %v1819_v57 = vshll.u32 %v1818_v14, 23  ;;  %vm3831_vm11 = vcmp.le.f32.partialorder %v1703_v40, 0.7853982  ;;  %v2070_v55 = vsel %vm2066_vm7, %v2050_v0, %v2053_v33 }
 0x10e   :  { %v2108_v44 = vshrl.u32 %v2077_v61, 16  ;;  %v2111_v29 = vmul.u32 %v2107_v17, %v2084_v35  ;;  %v2087_v32 = vmul.u32 %v2085_v7, %v2083_v58  ;;  %v2088_v31 = vmul.u32 %v2086_v38, %v2083_v58 }
 0x10f   :  { %v1820_v63 = vor.u32 4788187, %v1819_v57  ;;  %v1823_v54 = vcvt.s32.f32 %v1816_v20  ;;  %v2071_v18 = vsel %vm2069_vm6, %v2059_v6, 2102212464  ;;  %v2089_v28 = vmul.u32 %v2085_v7, %v2084_v35 }
 0x110   :  { %v2109_v9 = vmul.u32 %v2107_v17, %v2083_v58  ;;  %v2110_v25 = vmul.u32 %v2108_v44, %v2083_v58  ;;  %v1827_v40 = vsub.s32 4, %v3722_v5  ;;  %v2090_v11 = vmul.u32 %v2086_v38, %v2084_v35 }
 0x111   :  { %v1821_v12 = vand.u32 2147483647, %v1820_v63  ;;  %v2091_v34 = vshll.u32 %v2088_v31, 16  ;;  %v2093_v60 = vshll.u32 %v2089_v28, 16  ;;  %v2112_v39 = vmul.u32 %v2108_v44, %v2084_v35 }
 0x112   :  { %v2113_v33 = vshll.u32 %v2110_v25, 16  ;;  %v2115_v62 = vshll.u32 %v2111_v29, 16  ;;  %v2072_v51 = vsel %vm2068_vm2, %v3787_v2, %v2071_v18  ;;  %v2092_v6 = vshrl.u32 %v2088_v31, 16 }
 0x113   :  { %v1824_v23 = vmul.f32 %v1823_v54, %v1821_v12  ;;  %vm2095_vm12 = vc.u32 %v2087_v32, %v2091_v34  ;;  %v2097_v45 = vadd.s32 %v2091_v34, %v2087_v32  ;;  %v2114_v0 = vshrl.u32 %v2110_v25, 16 }
 0x114   :  { %v2096_v4 = vsel %vm2095_vm12, 1, %v2798_v50  ;;  %vm2117_vm13 = vc.u32 %v2109_v9, %v2113_v33  ;;  %v2119_v10 = vadd.s32 %v2113_v33, %v2109_v9  ;;  %v2094_v14 = vshrl.u32 %v2089_v28, 16 }
 0x115   :  { %v1825_v8 = vxor.u32 2147483648, %v1824_v23  ;;  %v2098_v52 = vadd.s32 %v2096_v4, %v2090_v11  ;;  %vm2099_vm14 = vc.u32 %v2097_v45, %v2093_v60  ;;  %v2118_v1 = vsel %vm2117_vm13, 1, %v2798_v50 }
 0x116   :  { %v2100_v41 = vsel %vm2099_vm14, 1, %v2798_v50  ;;  %v2120_v43 = vadd.s32 %v2118_v1, %v2112_v39  ;;  %vm2121_vm15 = vc.u32 %v2119_v10, %v2115_v62  ;;  %v1828_v58 = vsel %vm1705_vm10, %v1827_v40, %v3722_v5 }
 0x117   :  { %v1826_v2 = vsel %vm1705_vm10, %v1825_v8, %v1824_v23  ;;  %v2102_v61 = vadd.s32 %v2100_v41, %v2098_v52  ;;  %v2122_v24 = vsel %vm2121_vm15, 1, %v2798_v50  ;;  %v2116_v17 = vshrl.u32 %v2111_v29, 16 }
 0x118   :  { %v1829_v35 = vsel %vm3831_vm11, %v3421_v48, %v1826_v2  ;;  %v2124_v20 = vadd.s32 %v2122_v24, %v2120_v43  ;;  %v3855_v38 = vadd.s32 %v2119_v10, %v2115_v62  ;;  %v2073_v44 = vsel %vm2067_vm9, %v2070_v55, %v2072_v51 }
 0x119   :  { %v1831_v57 = vmul.f32 %v1829_v35, %v1829_v35  ;;  %v2103_v7 = vadd.s32 %v2102_v61, %v2092_v6  ;;  %v1830_v50 = vsel %vm3831_vm11, 0, %v1828_v58  ;;  %v2127_v29 = vmul.u32 %v3795_v47, %v2073_v44 }
 0x11a   :  { %v2125_v63 = vadd.s32 %v2124_v20, %v2114_v0  ;;  %v2001_v9 = vadd.s32 3, %v1830_v50  ;;  %v1847_v27 = vand.u32 3, %v1830_v50  ;;  %v1674_v47 = vmul.f32 %v3759_v21, %v3714_v46 }
 0x11b   :  { %v1832_v54 = vmul.f32 -0.001358992, %v1831_v57  ;;  %v1839_v32 = vmul.f32 -0.00019511016, %v1831_v57  ;;  %v2104_v5 = vadd.s32 %v2103_v7, %v2094_v14  ;;  %v1675_v6 = vmul.f32 %v3762_v59, %v3685_v13 }
 0x11c   :  { %v2126_v31 = vadd.s32 %v2125_v63, %v2116_v17  ;;  %v2002_v60 = vand.u32 3, %v2001_v9  ;;  %vm1852_vm8 = vcmp.eq.s32.totalorder %v1847_v27, 2  ;;  %vm1848_vm4 = vcmp.lt.s32.totalorder %v1847_v27, 2 }
 0x11d   :  { %v1833_v18 = vadd.f32 0.041655596, %v1832_v54  ;;  %v1840_v28 = vadd.f32 0.008332121, %v1839_v32  ;;  %vm2129_vm0 = vc.u32 %v2104_v5, %v3855_v38  ;;  %vm1849_vm5 = vcmp.eq.s32.totalorder %v1847_v27, 0 }
 0x11e   :  { %v2130_v25 = vadd.s32 1, %v2126_v31  ;;  %vm2007_vm1 = vcmp.eq.s32.totalorder %v2002_v60, 2  ;;  %vm2003_vm6 = vcmp.lt.s32.totalorder %v2002_v60, 2  ;;  %vm2004_vm7 = vcmp.eq.s32.totalorder %v2002_v60, 0 }
 0x11f   :  { %v1834_v12 = vmul.f32 %v1833_v18, %v1831_v57  ;;  %v1841_v40 = vmul.f32 %v1840_v28, %v1831_v57  ;;  %v1687_v43 = vmul.f32 %v3759_v21, %v3720_v42  ;;  %v1688_v2 = vmul.f32 %v3762_v59, %v3695_v3 }
 0x120   :  { %v2131_v22 = vsel %vm2129_vm0, %v2130_v25, %v2126_v31  ;;  %vm1846_vm2 = vweird.f32 %v3421_v48  ;;  %v3872_v17 = vadd.f32 %v1675_v6, %v1674_v47  ;;  %v1690_v48 = vsub.f32 0.0, %v3732_v16 }
 0x121   :  { %v1835_v55 = vadd.f32 -0.4999988, %v1834_v12  ;;  %v1842_v11 = vadd.f32 -0.16666654, %v1841_v40  ;;  %v2132_v34 = vadd.s32 %v2131_v22, %v2127_v29  ;;  %v3882_v50 = vadd.f32 %v1688_v2, %v1687_v43 }
 0x122   :  { %v2128_v12 = vadd.s32 %v3855_v38, %v2104_v5  ;;  %vm2036_vm10 = vcmp.lt.s32.totalorder %v3630_v19, 0  ;;  %vm2035_vm11 = vcmp.le.f32.partialorder %v2034_v56, 0.7853982  ;;  %v1662_v43 = vmul.f32 %v3762_v59, %v3681_v26 }
 0x123   :  { %v1836_v39 = vmul.f32 %v1835_v55, %v1831_v57  ;;  %v1843_v33 = vmul.f32 %v1842_v11, %v1831_v57  ;;  %v2133_v62 = vadd.s32 536870912, %v2132_v34  ;;  %v1677_v57 = vsub.f32 0.0, %v3728_v15 }
 0x125   :  { %v1837_v23 = vadd.f32 1.0, %v1836_v39  ;;  %v1844_v51 = vadd.f32 1.0, %v1843_v33  ;;  %v2134_v45 = vshrl.u32 %v2133_v62, 30 }
 0x127   :  { %v1845_v4 = vmul.f32 %v1844_v51, %v1829_v35  ;;  %v1853_v10 = vxor.u32 2147483648, %v1837_v23  ;;  %v2135_v8 = vshll.u32 %v2134_v45, 30  ;;  %v2158_v47 = vsub.s32 4, %v2134_v45 }
 0x129   :  { %v1850_v52 = vxor.u32 2147483648, %v1845_v4  ;;  %v1854_v1 = vsel %vm1852_vm8, %v1853_v10, %v1845_v4  ;;  %v2009_v41 = vsel %vm2007_vm1, %v1853_v10, %v1845_v4  ;;  %v2136_v0 = vsub.s32 %v2132_v34, %v2135_v8 }
 0x12a   :  { %v2159_v6 = vsel %vm2036_vm10, %v2158_v47, %v2134_v45  ;;  %vm2177_vm1 = vweird.f32 %v3630_v19 }
 0x12b   :  { %v1851_v14 = vsel %vm1849_vm5, %v1837_v23, %v1850_v52  ;;  %v2006_v61 = vsel %vm2004_vm7, %v1837_v23, %v1850_v52  ;;  %vm2137_vm3 = vcmp.lt.s32.totalorder %v2136_v0, 0  ;;  %v2138_v24 = vsub.s32 0, %v2136_v0 }
 0x12c   :  { %v1855_v58 = vsel %vm1848_vm4, %v1851_v14, %v1854_v1  ;;  %v2010_v35 = vsel %vm2003_vm6, %v2006_v61, %v2009_v41  ;;  %v2161_v8 = vsel %vm2035_vm11, 0, %v2159_v6  ;;  %v1658_v41 = vsub.f32 0.0, %v3762_v59 }
 0x12d   :  { %v3874_v20 = vsel %vm1846_vm2, nan, %v1855_v58  ;;  %v3877_v7 = vsel %vm1846_vm2, nan, %v2010_v35  ;;  %v2139_v63 = vsel %vm2137_vm3, %v2138_v24, %v2136_v0  ;;  %v2332_v56 = vadd.s32 3, %v2161_v8 }
 0x12e   :  { %v3880_v44 = vsub.f32 0.0, %v3874_v20  ;;  %v2022_v54 = vmul.f32 %v3877_v7, %v3872_v17  ;;  %v2028_v31 = vmul.f32 %v3877_v7, %v3882_v50  ;;  %v2140_v28 = vclz %v2139_v63 }
 0x12f   :  { %v1664_v58 = vsub.f32 0.0, %v3716_v36  ;;  %v1665_v35 = vmul.f32 %v1658_v41, %v3708_v30  ;;  %v1666_v63 = vmul.f32 %v3759_v21, %v3681_v26  ;;  %v1679_v59 = vmul.f32 %v3759_v21, %v3685_v13 }
 0x130   :  { %v2023_v32 = vmul.f32 %v3880_v44, %v1677_v57  ;;  %v2029_v18 = vmul.f32 %v3880_v44, %v1690_v48  ;;  %v2678_v25 = vadd.s32 4294967294, %v2140_v28  ;;  %v1678_v28 = vmul.f32 %v1658_v41, %v3714_v46 }
 0x131   :  { %v2017_v46 = vmul.f32 %v3880_v44, %v1664_v58  ;;  %v2020_v13 = vmul.f32 %v3877_v7, %v1677_v57 }
 0x132   :  { %v3895_v29 = vadd.f32 %v2023_v32, %v2022_v54  ;;  %v3897_v9 = vadd.f32 %v2029_v18, %v2028_v31  ;;  %vm2679_vm9 = vcmp.lt.s32.totalorder %v2678_v25, 0  ;;  %v2178_v31 = vand.u32 3, %v2161_v8 }
 0x133   :  { %v2143_v40 = vsel %vm2679_vm9, 0, %v2678_v25  ;;  %v2333_v18 = vand.u32 3, %v2332_v56 }
 0x134   :  { %v2144_v22 = vsub.s32 32, %v2143_v40  ;;  %v2145_v55 = vshll.u32 %v2136_v0, %v2143_v40  ;;  %v2148_v11 = vsub.s32 4294967266, %v2143_v40  ;;  %v1661_v0 = vmul.f32 %v3759_v21, %v3708_v30 }
 0x135   :  { %v1667_v40 = vadd.f32 %v1666_v63, %v1665_v35  ;;  %v2014_v30 = vmul.f32 %v3877_v7, %v1664_v58  ;;  %vm2183_vm12 = vcmp.eq.s32.totalorder %v2178_v31, 2  ;;  %vm2338_vm13 = vcmp.eq.s32.totalorder %v2333_v18, 2 }
 0x136   :  { %v2146_v34 = vshrl.u32 %v2128_v12, %v2144_v22  ;;  %v2149_v27 = vadd.s32 127, %v2148_v11  ;;  %v1663_v45 = vadd.f32 %v1662_v43, %v1661_v0  ;;  %v1691_v22 = vmul.f32 %v1658_v41, %v3720_v42 }
 0x137   :  { %v2025_v42 = vmul.f32 %v3874_v20, %v3882_v50  ;;  %vm2179_vm14 = vcmp.lt.s32.totalorder %v2178_v31, 2  ;;  %vm2180_vm15 = vcmp.eq.s32.totalorder %v2178_v31, 0  ;;  %vm2335_vm0 = vcmp.eq.s32.totalorder %v2333_v18, 0 }
 0x138   :  { %v2147_v60 = vor.u32 %v2146_v34, %v2145_v55  ;;  %v2150_v39 = vshll.u32 %v2149_v27, 23  ;;  %v2013_v36 = vmul.f32 %v3874_v20, %v1663_v45  ;;  %v2016_v26 = vmul.f32 %v3877_v7, %v1663_v45 }
 0x139   :  { %v2019_v55 = vmul.f32 %v3874_v20, %v3872_v17  ;;  %v2026_v27 = vmul.f32 %v3877_v7, %v1690_v48  ;;  %v1692_v17 = vmul.f32 %v3759_v21, %v3695_v3  ;;  %vm2334_vm8 = vcmp.lt.s32.totalorder %v2333_v18, 2 }
 0x13a   :  { %v2151_v33 = vor.u32 4788187, %v2150_v39  ;;  %v2154_v62 = vcvt.s32.f32 %v2147_v60  ;;  %v2373_v6 = vmul.f32 0.107, %v3897_v9 }
 0x13b   :  { %v2021_v16 = vadd.f32 %v2020_v13, %v2019_v55  ;;  %v2027_v20 = vadd.f32 %v2026_v27, %v2025_v42  ;;  %v1693_v48 = vadd.f32 %v1692_v17, %v1691_v22 }
 0x13c   :  { %v2152_v23 = vand.u32 2147483647, %v2151_v33  ;;  %v1680_v33 = vadd.f32 %v1679_v59, %v1678_v28 }
 0x13e   :  { %v2155_v51 = vmul.f32 %v2154_v62, %v2152_v23  ;;  %v2015_v62 = vadd.f32 %v2014_v30, %v2013_v36  ;;  %v2018_v23 = vadd.f32 %v2017_v46, %v2016_v26 }
 0x140   :  { %v2156_v38 = vxor.u32 2147483648, %v2155_v51  ;;  %v2355_v21 = vmul.f32 0.107, %v2018_v23  ;;  %v3941_v18 = vsub.f32 0.0, %v2018_v23 }
 0x142   :  { %v2157_v5 = vsel %vm2036_vm10, %v2156_v38, %v2155_v51  ;;  %v3954_v30 = vand.u32 2147483647, %v3941_v18 }
 0x143   :  { %v2160_v4 = vsel %vm2035_vm11, %v3630_v19, %v2157_v5  ;;  %v2364_v5 = vmul.f32 0.107, %v3895_v29 }
 0x144   :  { %v2162_v10 = vmul.f32 %v2160_v4, %v2160_v4 }
 0x146   :  { %v2163_v52 = vmul.f32 -0.001358992, %v2162_v10  ;;  %v2170_v1 = vmul.f32 -0.00019511016, %v2162_v10 }
 0x148   :  { %v2164_v2 = vadd.f32 0.041655596, %v2163_v52  ;;  %v2171_v14 = vadd.f32 0.008332121, %v2170_v1 }
 0x14a   :  { %v2165_v61 = vmul.f32 %v2164_v2, %v2162_v10  ;;  %v2172_v24 = vmul.f32 %v2171_v14, %v2162_v10 }
 0x14c   :  { %v2166_v54 = vadd.f32 -0.4999988, %v2165_v61  ;;  %v2173_v32 = vadd.f32 -0.16666654, %v2172_v24 }
 0x14e   :  { %v2167_v25 = vmul.f32 %v2166_v54, %v2162_v10  ;;  %v2174_v12 = vmul.f32 %v2173_v32, %v2162_v10 }
 0x150   :  { %v2168_v11 = vadd.f32 1.0, %v2167_v25  ;;  %v2175_v34 = vadd.f32 1.0, %v2174_v12 }
 0x152   :  { %v2176_v60 = vmul.f32 %v2175_v34, %v2160_v4  ;;  %v2184_v39 = vxor.u32 2147483648, %v2168_v11 }
 0x154   :  { %v2181_v15 = vxor.u32 2147483648, %v2176_v60  ;;  %v2185_v44 = vsel %vm2183_vm12, %v2184_v39, %v2176_v60  ;;  %v2340_v57 = vsel %vm2338_vm13, %v2184_v39, %v2176_v60 }
 0x156   :  { %v2182_v7 = vsel %vm2180_vm15, %v2168_v11, %v2181_v15  ;;  %v2337_v50 = vsel %vm2335_vm0, %v2168_v11, %v2181_v15 }
 0x157   :  { %v2186_v51 = vsel %vm2179_vm14, %v2182_v7, %v2185_v44  ;;  %v2341_v3 = vsel %vm2334_vm8, %v2337_v50, %v2340_v57 }
 0x158   :  { %v2187_v47 = vsel %vm2177_vm1, nan, %v2186_v51  ;;  %v2342_v38 = vsel %vm2177_vm1, nan, %v2341_v3 }
 0x159   :  { %v2343_v4 = vmul.f32 0.088, %v2187_v47  ;;  %v2344_v10 = vsub.f32 0.0, %v2187_v47  ;;  %v2345_v8 = vmul.f32 0.088, %v2342_v38  ;;  %v2346_v52 = vmul.f32 %v2187_v47, %v2015_v62 }
 0x15a   :  { %v2347_v19 = vmul.f32 %v2342_v38, %v1667_v40  ;;  %v2349_v1 = vmul.f32 %v2342_v38, %v2015_v62  ;;  %v2358_v41 = vmul.f32 %v2342_v38, %v2021_v16  ;;  %v2367_v0 = vmul.f32 %v2342_v38, %v2027_v20 }
 0x15b   :  { %v2350_v43 = vmul.f32 %v2344_v10, %v1667_v40  ;;  %v2352_v2 = vmul.f32 %v2343_v4, %v2015_v62  ;;  %v2353_v14 = vmul.f32 %v2345_v8, %v1667_v40  ;;  %v2359_v56 = vmul.f32 %v2344_v10, %v1680_v33 }
 0x15c   :  { %v3937_v61 = vadd.f32 %v2347_v19, %v2346_v52  ;;  %v2361_v24 = vmul.f32 %v2343_v4, %v2021_v16  ;;  %v2362_v45 = vmul.f32 %v2345_v8, %v1680_v33  ;;  %v2368_v58 = vmul.f32 %v2344_v10, %v1693_v48 }
 0x15d   :  { %v2351_v29 = vadd.f32 %v2350_v43, %v2349_v1  ;;  %v2354_v35 = vadd.f32 %v2353_v14, %v2352_v2  ;;  %v2360_v9 = vadd.f32 %v2359_v56, %v2358_v41  ;;  %v2370_v63 = vmul.f32 %v2343_v4, %v2027_v20 }
 0x15e   :  { %v2363_v54 = vadd.f32 %v2362_v45, %v2361_v24  ;;  %v3939_v32 = vadd.f32 %v2368_v58, %v2367_v0  ;;  %v2371_v31 = vmul.f32 %v2345_v8, %v1693_v48  ;;  %v3948_v12 = vand.u32 2147483647, %v3937_v61 }
 0x15f   :  { %v2356_v28 = vadd.f32 %v2355_v21, %v2354_v35  ;;  %v3943_v59 = vsub.f32 0.0, %v2360_v9  ;;  %v3945_v25 = vclamps-f32 %v2351_v29, 1.0 }
 0x160   :  { %v2365_v40 = vadd.f32 %v2364_v5, %v2363_v54  ;;  %v2372_v22 = vadd.f32 %v2371_v31, %v2370_v63  ;;  %v3951_v36 = vand.u32 2147483647, %v3939_v32  ;;  %v2518_v13 = vmax.f32 %v3948_v12, %v3954_v30 }
 0x161   :  { %v3957_v26 = vadd.f32 %v2356_v28, %v3798_v37  ;;  %v3960_v55 = vand.u32 2147483647, %v3943_v59  ;;  %v2439_v11 = vmul.f32 %v3945_v25, %v3945_v25  ;;  %v3996_v35 = vand.u32 2147483647, %v3945_v25 }
 0x162   :  { %v3965_v34 = vadd.f32 %v2365_v40, %v3810_v49  ;;  %v2374_v46 = vadd.f32 %v2373_v6, %v2372_v22  ;;  %2699 = vrcp.f32 %v2518_v13  ;;  %v2530_v7 = vand.u32 2147483648, %v2518_v13 }
 0x163   :  { %v2380_v42 = vmax.f32 %v3951_v36, %v3960_v55  ;;  %v2440_v27 = vsub.f32 1.0, %v2439_v11  ;;  %v2379_v16 = vmin.f32 %v3951_v36, %v3960_v55  ;;  %vm2524_vm7 = vweird.f32 %v2518_v13 }
 0x164   :  { %v3972_v37 = vadd.f32 %v2374_v46, %v3818_v53  ;;  %v2528_v51 = vand.u32 2147483647, %v2518_v13  ;;  %v2531_v38 = vor.u32 1.1754944e-38, %v2530_v7  ;;  %v2517_v6 = vmin.f32 %v3948_v12, %v3954_v30 }
 0x165   :  { %2701 = vrcp.f32 %v2380_v42  ;;  %v2441_v60 = vmax.f32 %v2440_v27, 0.0  ;;  %vm2386_vm4 = vweird.f32 %v2380_v42  ;;  %v2392_v44 = vand.u32 2147483648, %v2380_v42 }
 0x166   :  { %v2390_v23 = vand.u32 2147483647, %v2380_v42  ;;  %vm2529_vm10 = vcmp.eq.f32.partialorder %v2528_v51, 8.507059e+37  ;;  %vm2424_vm13 = vcmp.ne.f32.partialorder %v3939_v32, %v3939_v32  ;;  %vm2425_vm14 = vcmp.ne.f32.partialorder %v3943_v59, %v3943_v59 }
 0x167   :  { %2703 = vrsqrt.f32 %v2441_v60  ;;  %v2393_v3 = vor.u32 1.1754944e-38, %v2392_v44  ;;  %vm2449_vm11 = vcmp.eq.f32.partialorder %v2441_v60, inf  ;;  %v2452_v56 = vand.u32 2147483648, %v2441_v60  ;;  %vm4010_vm15 = vmor %vm2424_vm13, %vm2425_vm14 }
 0x168   :  { %v2700_v39 = vpop.eup %2699  ;;  %vm2391_vm9 = vcmp.eq.f32.partialorder %v2390_v23, 8.507059e+37  ;;  %vm2451_vm12 = vcmp.eq.f32.partialorder %v2441_v60, 0.0  ;;  %vm2430_vm0 = vcmp.eq.s32.totalorder %v3951_v36, inf  ;;  %vm2431_vm8 = vcmp.eq.s32.totalorder %v3960_v55, inf }
 0x169   :  { %v2520_v15 = vmul.f32 %v2700_v39, %v2518_v13  ;;  %vm2525_vm2 = vweird.f32 %v2700_v39  ;;  %vm4016_vm1 = vmand %vm2430_vm0, %vm2431_vm8  ;;  %vm2552_vm13 = vcmp.gt.f32.partialorder %v3954_v30, %v3948_v12  ;;  %vm2508_vm8 = vcmp.eq.s32.totalorder %v3996_v35, inf }
 0x16a   :  { %vm2526_vm3 = vmor %vm2524_vm7, %vm2525_vm2  ;;  %vm2420_vm2 = vcmp.lt.s32.totalorder %v3939_v32, 0 }
 0x16b   :  { %v2702_v17 = vpop.eup %2701  ;;  %v2521_v57 = vsub.f32 1.0, %v2520_v15 }
 0x16c   :  { %v2382_v49 = vmul.f32 %v2702_v17, %v2380_v42  ;;  %vm2387_vm5 = vweird.f32 %v2702_v17 }
 0x16d   :  { %v2704_v33 = vpop.eup %2703  ;;  %v2522_v20 = vmul.f32 %v2700_v39, %v2521_v57  ;;  %vm3976_vm6 = vmor %vm2386_vm4, %vm2387_vm5 }
 0x16e   :  { %v2383_v62 = vsub.f32 1.0, %v2382_v49  ;;  %v2443_v53 = vmul.f32 %v2704_v33, %v2441_v60 }
 0x16f   :  { %v2523_v47 = vadd.f32 %v2700_v39, %v2522_v20 }
 0x170   :  { %v2384_v50 = vmul.f32 %v2702_v17, %v2383_v62  ;;  %v2444_v21 = vmul.f32 %v2704_v33, %v2443_v53 }
 0x171   :  { %v2527_v10 = vsel %vm2526_vm3, %v2700_v39, %v2523_v47  ;;  %vm2414_vm3 = vcmp.gt.f32.partialorder %v3960_v55, %v3951_v36 }
 0x172   :  { %v2385_v5 = vadd.f32 %v2702_v17, %v2384_v50  ;;  %v2445_v4 = vmul.f32 0.5, %v2444_v21  ;;  %v2532_v52 = vsel %vm2529_vm10, %v2531_v38, %v2527_v10  ;;  %vm2422_vm10 = vcmp.eq.f32.partialorder %v3943_v59, 0.0 }
 0x173   :  { %v3984_v41 = vmul.f32 %v2532_v52, %v2517_v6 }
 0x174   :  { %v2389_v8 = vsel %vm3976_vm6, %v2702_v17, %v2385_v5  ;;  %v2446_v1 = vsub.f32 1.5, %v2445_v4 }
 0x175   :  { %v2394_v19 = vsel %vm2391_vm9, %v2393_v3, %v2389_v8  ;;  %v3990_v2 = vmul.f32 %v3984_v41, %v3984_v41  ;;  %vm2417_vm9 = vcmp.lt.f32.partialorder %v3939_v32, 0.0  ;;  %v2580_v32 = vld [vmem:[#allocation5 + $0x8] sm:$0xff] }
 0x176   :  { %v3986_v0 = vmul.f32 %v2394_v19, %v2379_v16  ;;  %v2447_v43 = vmul.f32 %v2704_v33, %v2446_v1 }
 0x177   :  { %v2535_v45 = vmul.f32 0.002785687, %v3990_v2 }
 0x178   :  { %v2396_v14 = vmul.f32 %v3986_v0, %v3986_v0  ;;  %v2448_v24 = vmul.f32 %v2447_v43, %v2441_v60 }
 0x179   :  { %v2536_v9 = vadd.f32 -0.015866, %v2535_v45 }
 0x17a   :  { %v2397_v58 = vmul.f32 0.002785687, %v2396_v14  ;;  %v2450_v29 = vsel %vm2449_vm11, %v2441_v60, %v2448_v24 }
 0x17b   :  { %v3998_v54 = vsel %vm2451_vm12, %v2452_v56, %v2450_v29  ;;  %v2537_v28 = vmul.f32 %v2536_v9, %v3990_v2  ;;  %vm2502_vm12 = vcmp.ne.f32.partialorder %v3945_v25, %v3945_v25 }
 0x17c   :  { %v2398_v63 = vadd.f32 -0.015866, %v2397_v58  ;;  %v4001_v31 = vand.u32 2147483647, %v3998_v54  ;;  %vm2501_vm11 = vcmp.ne.f32.partialorder %v3998_v54, %v3998_v54 }
 0x17d   :  { %v2538_v46 = vadd.f32 0.04247222, %v2537_v28  ;;  %vm4053_vm14 = vmor %vm2501_vm11, %vm2502_vm12  ;;  %vm2568_vm11 = vcmp.eq.s32.totalorder %v3948_v12, inf  ;;  %vm2497_vm12 = vcmp.lt.s32.totalorder %v3998_v54, 0 }
 0x17e   :  { %v2399_v40 = vmul.f32 %v2398_v63, %v2396_v14  ;;  %v2457_v22 = vmax.f32 %v4001_v31, %v3996_v35  ;;  %v2456_v51 = vmin.f32 %v4001_v31, %v3996_v35  ;;  %vm2507_vm0 = vcmp.eq.s32.totalorder %v4001_v31, inf }
 0x17f   :  { %v2539_v39 = vmul.f32 %v2538_v46, %v3990_v2 }
 0x180   :  { %v2400_v11 = vadd.f32 0.04247222, %v2399_v40  ;;  %2705 = vrcp.f32 %v2457_v22  ;;  %vm2463_vm4 = vweird.f32 %v2457_v22  ;;  %v2467_v62 = vand.u32 2147483647, %v2457_v22 }
 0x181   :  { %v2540_v15 = vadd.f32 -0.074975304, %v2539_v39  ;;  %v2469_v23 = vand.u32 2147483648, %v2457_v22 }
 0x182   :  { %v2401_v13 = vmul.f32 %v2400_v11, %v2396_v14  ;;  %vm2468_vm7 = vcmp.eq.f32.partialorder %v2467_v62, 8.507059e+37 }
 0x183   :  { %v2541_v33 = vmul.f32 %v2540_v15, %v3990_v2  ;;  %v2470_v3 = vor.u32 1.1754944e-38, %v2469_v23 }
 0x184   :  { %v2402_v27 = vadd.f32 -0.074975304, %v2401_v13 }
 0x185   :  { %v2542_v20 = vadd.f32 0.1064488, %v2541_v33 }
 0x186   :  { %v2403_v17 = vmul.f32 %v2402_v27, %v2396_v14  ;;  %v2706_v49 = vpop.eup %2705  ;;  %v2800_v27 = vmov 0.7853982  }
 0x187   :  { %v2459_v57 = vmul.f32 %v2706_v49, %v2457_v22  ;;  %vm2464_vm5 = vweird.f32 %v2706_v49  ;;  %v2543_v48 = vmul.f32 %v2542_v20, %v3990_v2  ;;  %v2429_v39 = vsel %vm2417_vm9, 2.3561945, %v2800_v27 }
 0x188   :  { %v2404_v44 = vadd.f32 0.1064488, %v2403_v17  ;;  %vm2465_vm6 = vmor %vm2463_vm4, %vm2464_vm5  ;;  %vm2555_vm5 = vcmp.lt.f32.partialorder %v3937_v61, 0.0 }
 0x189   :  { %v2460_v53 = vsub.f32 1.0, %v2459_v57  ;;  %v2544_v38 = vadd.f32 -0.14207031, %v2543_v48  ;;  %vm4062_vm4 = vmand %vm2507_vm0, %vm2508_vm8  ;;  %v2585_v48 = vld [vmem:[#allocation5 + $0x10] sm:$0xff]  ;;  %vm2499_vm0 = vcmp.eq.f32.partialorder %v3945_v25, 0.0 }
 0x18a   :  { %v2405_v16 = vmul.f32 %v2404_v44, %v2396_v14 }
 0x18b   :  { %v2461_v50 = vmul.f32 %v2706_v49, %v2460_v53  ;;  %v2545_v4 = vmul.f32 %v2544_v38, %v3990_v2  ;;  %v2575_v53 = vld [vmem:[#allocation5] sm:$0xff] }
 0x18c   :  { %v2406_v7 = vadd.f32 -0.14207031, %v2405_v16  ;;  %v2576_v12 = vsub.f32 %v3957_v26, %v2575_v53 }
 0x18d   :  { %v2462_v47 = vadd.f32 %v2706_v49, %v2461_v50  ;;  %v2546_v19 = vadd.f32 0.19993454, %v2545_v4 }
 0x18e   :  { %v2407_v21 = vmul.f32 %v2406_v7, %v2396_v14  ;;  %v2435_v7 = vand.u32 2147483648, %v3943_v59  ;;  %v2567_v59 = vsel %vm2555_vm5, 2.3561945, %v2800_v27 }
 0x18f   :  { %v2466_v6 = vsel %vm2465_vm6, %v2706_v49, %v2462_v47  ;;  %v2547_v56 = vmul.f32 %v2546_v19, %v3990_v2  ;;  %vm2558_vm6 = vcmp.lt.s32.totalorder %v3937_v61, 0 }
 0x190   :  { %v2408_v5 = vadd.f32 0.19993454, %v2407_v21  ;;  %v2471_v10 = vsel %vm2468_vm7, %v2470_v3, %v2466_v6  ;;  %vm2562_vm7 = vcmp.ne.f32.partialorder %v3937_v61, %v3937_v61  ;;  %v2590_v6 = vld [vmem:[#allocation5 + $0x18] sm:$0xff] }
 0x191   :  { %v4026_v52 = vmul.f32 %v2471_v10, %v2456_v51  ;;  %v2548_v58 = vadd.f32 -0.33333147, %v2547_v56  ;;  %v2577_v10 = vmul.f32 %v2576_v12, %v2576_v12 }
 0x192   :  { %v2409_v8 = vmul.f32 %v2408_v5, %v2396_v14  ;;  %v2586_v5 = vsub.f32 %v3972_v37, %v2585_v48 }
 0x193   :  { %v4030_v43 = vmul.f32 %v4026_v52, %v4026_v52  ;;  %v2549_v63 = vmul.f32 %v2548_v58, %v3990_v2  ;;  %v2799_v2 = vmov 0.0  }
 0x194   :  { %v2410_v1 = vadd.f32 -0.33333147, %v2409_v8  ;;  %v2421_v13 = vsel %vm2420_vm2, 3.1415927, %v2799_v2  ;;  %v2559_v33 = vsel %vm2558_vm6, 3.1415927, %v2799_v2 }
 0x195   :  { %v2474_v45 = vmul.f32 0.002785687, %v4030_v43  ;;  %v2550_v22 = vmul.f32 %v2549_v63, %v3984_v41  ;;  %vm2560_vm2 = vcmp.eq.f32.partialorder %v3941_v18, 0.0 }
 0x196   :  { %v2411_v24 = vmul.f32 %v2410_v1, %v2396_v14  ;;  %v2587_v1 = vmul.f32 %v2586_v5, %v2586_v5 }
 0x197   :  { %v2475_v9 = vadd.f32 -0.015866, %v2474_v45  ;;  %v2551_v46 = vadd.f32 %v2550_v22, %v3984_v41 }
 0x198   :  { %v2412_v29 = vmul.f32 %v2411_v24, %v3986_v0 }
 0x199   :  { %v2476_v40 = vmul.f32 %v2475_v9, %v4030_v43  ;;  %v2553_v15 = vsub.f32 1.5707964, %v2551_v46 }
 0x19a   :  { %v2413_v28 = vadd.f32 %v2412_v29, %v3986_v0 }
 0x19b   :  { %v2477_v11 = vadd.f32 0.04247222, %v2476_v40  ;;  %v2554_v57 = vsel %vm2552_vm13, %v2553_v15, %v2551_v46  ;;  %v44_v40 = vlaneseq  ;;  %vm2494_vm13 = vcmp.lt.f32.partialorder %v3998_v54, 0.0 }
 0x19c   :  { %v2415_v14 = vsub.f32 1.5707964, %v2413_v28  ;;  %v2556_v16 = vsub.f32 3.1415927, %v2554_v57 }
 0x19d   :  { %v2478_v55 = vmul.f32 %v2477_v11, %v4030_v43  ;;  %v45_v11 = vshrl.u32 %v44_v40, 7 }
 0x19e   :  { %v2416_v36 = vsel %vm2414_vm3, %v2415_v14, %v2413_v28  ;;  %vm2563_vm3 = vcmp.ne.f32.partialorder %v3941_v18, %v3941_v18  ;;  %v2557_v21 = vsel %vm2555_vm5, %v2556_v16, %v2554_v57  ;;  %v2600_v57 = vld [vmem:[#allocation5 + $0x28] sm:$0xff] }
 0x19f   :  { %v2418_v41 = vsub.f32 3.1415927, %v2416_v36  ;;  %v2479_v49 = vadd.f32 -0.074975304, %v2478_v55  ;;  %v2561_v47 = vsel %vm2560_vm2, %v2559_v33, %v2557_v21  ;;  %v2573_v55 = vand.u32 2147483648, %v3941_v18 }
 0x1a1   :  { %v2419_v44 = vsel %vm2417_vm9, %v2418_v41, %v2416_v36  ;;  %v2480_v23 = vmul.f32 %v2479_v49, %v4030_v43  ;;  %vm4085_vm9 = vmor %vm2562_vm7, %vm2563_vm3  ;;  %v2512_v49 = vand.u32 2147483648, %v3945_v25 }
 0x1a2   :  { %v2423_v62 = vsel %vm2422_vm10, %v2421_v13, %v2419_v44  ;;  %vm2569_vm10 = vcmp.eq.s32.totalorder %v3954_v30, inf  ;;  %v2581_v30 = vsub.f32 %v3965_v34, %v2580_v32  ;;  %v2565_v38 = vsel %vm4085_vm9, nan, %v2561_v47 }
 0x1a3   :  { %v2427_v20 = vsel %vm4010_vm15, nan, %v2423_v62  ;;  %v2481_v3 = vadd.f32 0.1064488, %v2480_v23  ;;  %vm2570_vm15 = vmand %vm2568_vm11, %vm2569_vm10  ;;  %v2498_v13 = vsel %vm2497_vm12, 3.1415927, %v2799_v2  ;;  %v2595_v62 = vld [vmem:[#allocation5 + $0x20] sm:$0xff] }
 0x1a4   :  { %v2433_v51 = vsel %vm4016_vm1, %v2429_v39, %v2427_v20  ;;  %v2571_v61 = vsel %vm2570_vm15, %v2567_v59, %v2565_v38  ;;  %v2582_v8 = vmul.f32 %v2581_v30, %v2581_v30  ;;  %vm2491_vm1 = vcmp.gt.f32.partialorder %v3996_v35, %v4001_v31 }
 0x1a5   :  { %v2434_v42 = vand.u32 2147483647, %v2433_v51  ;;  %v2482_v60 = vmul.f32 %v2481_v3, %v4030_v43  ;;  %v47_v39 = vand.u32 127, %v44_v40  ;;  %v48_v31 = vmul.u32 128, %v45_v11 }
 0x1a6   :  { %v2583_v56 = vadd.f32 %v2582_v8, %v2577_v10 }
 0x1a7   :  { %v2436_v4 = vor.u32 %v2435_v7, %v2434_v42  ;;  %v2483_v19 = vadd.f32 -0.14207031, %v2482_v60  ;;  %v49_v23 = vadd.s32 %v48_v31, %v47_v39 }
 0x1a8   :  { %v2588_v45 = vadd.f32 %v2587_v1, %v2583_v56 }
 0x1a9   :  { %v2591_v24 = vsub.f32 %v2436_v4, %v2590_v6  ;;  %v2484_v26 = vmul.f32 %v2483_v19, %v4030_v43  ;;  %vm2606_vm8 = vcmp.lt.s32.totalorder %v49_v23, 8 }
 0x1aa   :  { %v2684_v0 = vsel %vm2606_vm8, 1.0, %v2799_v2 }
 0x1ab   :  { %v2592_v34 = vmul.f32 %v2591_v24, %v2591_v24  ;;  %v2485_v58 = vadd.f32 0.19993454, %v2484_v26 }
 0x1ad   :  { %v2593_v29 = vadd.f32 %v2592_v34, %v2588_v45  ;;  %v2486_v9 = vmul.f32 %v2485_v58, %v4030_v43 }
 0x1af   :  { %v2487_v63 = vadd.f32 -0.33333147, %v2486_v9 }
 0x1b1   :  { %v2488_v37 = vmul.f32 %v2487_v63, %v4030_v43  ;;  %v2572_v43 = vand.u32 2147483647, %v2571_v61 }
 0x1b3   :  { %v2489_v28 = vmul.f32 %v2488_v37, %v4026_v52  ;;  %v2574_v54 = vor.u32 %v2573_v55, %v2572_v43 }
 0x1b5   :  { %v2490_v22 = vadd.f32 %v2489_v28, %v4026_v52  ;;  %v2506_v52 = vsel %vm2494_vm13, 2.3561945, %v2800_v27  ;;  %v2601_v16 = vsub.f32 %v2574_v54, %v2600_v57 }
 0x1b7   :  { %v2492_v14 = vsub.f32 1.5707964, %v2490_v22  ;;  %v2602_v32 = vmul.f32 %v2601_v16, %v2601_v16 }
 0x1b9   :  { %v2493_v46 = vsel %vm2491_vm1, %v2492_v14, %v2490_v22 }
 0x1ba   :  { %v2495_v36 = vsub.f32 3.1415927, %v2493_v46 }
 0x1bc   :  { %v2496_v41 = vsel %vm2494_vm13, %v2495_v36, %v2493_v46 }
 0x1bd   :  { %v2500_v35 = vsel %vm2499_vm0, %v2498_v13, %v2496_v41 }
 0x1be   :  { %v2504_v15 = vsel %vm4053_vm14, nan, %v2500_v35 }
 0x1bf   :  { %v2510_v44 = vsel %vm4062_vm4, %v2506_v52, %v2504_v15 }
 0x1c0   :  { %v2511_v33 = vand.u32 2147483647, %v2510_v44 }
 0x1c2   :  { %v2513_v18 = vor.u32 %v2512_v49, %v2511_v33 }
 0x1c4   :  { %v2596_v53 = vsub.f32 %v2513_v18, %v2595_v62 }
 0x1c6   :  { %v2597_v27 = vmul.f32 %v2596_v53, %v2596_v53 }
 0x1c8   :  { %v2598_v20 = vadd.f32 %v2597_v27, %v2593_v29 }
 0x1ca   :  { %v2603_v25 = vadd.f32 %v2602_v32, %v2598_v20 }
 0x1cc   :  { %v2609_v17 = vmul.f32 %v2684_v0, %v2603_v25 }
 0x1ce   :  { %2611 = vst [vmem:[#allocation7] sm:$0xff] %v2609_v17 }
 0x1cf   :  { %2622 = dma.vmem_to_hbm [thread:$0]  %s2618_s1, 128, %s2620_s23, [#allocation4]  }
 0x1d0   :  { %2786 = dma.done.wait [#allocation4], 128  }
 0x1d1   :  { %2787 = vsyncadd [#allocation4], 4294967168 }
 0x1d2   :  { %2627 = vsyncpa [#allocation3], 1 }
 0x1d3   :  { %2628 = vsyncpa [#allocation6], 1 }
 0x1d4   :  { %2629 = vsyncpa [#allocation4], 1 }

</bundles_post_ra>
